<compile_context>
chip_gen: v6e
topology: v6e:2x2x1
jax: 0.10.0
libtpu: 0.0.40
codegen_flags: <defaults>
</compile_context>

<pallas_src>
import functools

import jax
import jax.numpy as jnp
from jax.experimental import pallas as pl
from jax.experimental.pallas import tpu as pltpu


def _round_up(x, m):
    return ((x + m - 1) // m) * m


def _pick_tile_h(ho, n_batch):
    """Largest row tile dividing Ho, keeping >= 2 total grid steps when possible
    (so v7x's two TensorCores both get work)."""
    cands = [c for c in (16, 8, 4, 2, 1) if ho % c == 0]
    for c in cands:
        if n_batch * (ho // c) >= 2:
            return c
    return cands[0]


def _pick_vmem_limit():
    """Generation-aware scoped-VMEM limit: ~3/4 of physical, capped at 96 MiB."""
    try:
        cap = pltpu.get_tpu_info().vmem_capacity_bytes
    except Exception:
        cap = 64 * 1024 * 1024  # conservative (v7x-sized) fallback
    return int(min(cap * 3 // 4, 96 * 1024 * 1024))


def _conv_bn_relu_kernel(x_ref, w_ref, scale_ref, bias_ref, o_ref, patch_ref,
                         *, kh_size, kw_size, tile_h):
    # x_ref:     (1, Hp, Wp_pad, Cin)       padded image (bf16), resident across h-tiles
    # w_ref:     (K_pad, Cout_pad)          im2col weights (bf16), zero rows for K..K_pad
    # scale_ref: (1, Cout_pad)  f32         gamma / sqrt(var + eps)
    # bias_ref:  (1, Cout_pad)  f32         beta - mean * scale
    # o_ref:     (1, tile_h, Wo_pad, Cout_pad) f32 output row tile
    # patch_ref: (tile_h, Wo_pad, K_pad)    bf16 im2col scratch (lane-aligned K)
    wo_pad = o_ref.shape[2]
    cout_pad = o_ref.shape[3]
    cin = x_ref.shape[3]
    k = kh_size * kw_size * cin
    k_pad = w_ref.shape[0]
    m = tile_h * wo_pad

    row0 = pl.multiple_of(pl.program_id(1) * tile_h, tile_h)

    # One band load per grid step; the (kh, kw) windows below are register slices
    # of this value instead of separate unaligned VMEM loads.
    band = x_ref[0, pl.ds(row0, tile_h + kh_size - 1), :, :]    # (tile_h+KH-1, Wp, Cin)

    # Zero the padded K lanes every step (scratch is uninitialized; the padded
    # weight rows are zero but stale NaN * 0 would still poison the accumulator).
    if k_pad > k:
        patch_ref[:, :, k:] = jnp.zeros((tile_h, wo_pad, k_pad - k),
                                        dtype=patch_ref.dtype)

    # im2col: tap (kh, kw) occupies lanes [t*Cin, (t+1)*Cin) of the patch.
    for kh in range(kh_size):
        rows = band[kh:kh + tile_h]                              # (tile_h, Wp, Cin)
        for kw in range(kw_size):
            t = kh * kw_size + kw
            patch_ref[:, :, t * cin:(t + 1) * cin] = rows[:, kw:kw + wo_pad, :]

    # Single lane-aligned MXU contraction over K_pad (bf16 x bf16 -> f32 acc).
    patch = patch_ref[...].reshape(m, k_pad)
    acc = jnp.dot(patch, w_ref[...], preferred_element_type=jnp.float32)

    # Fused inference BatchNorm + ReLU, lane-dense f32 epilogue.
    y = jnp.maximum(acc * scale_ref[...] + bias_ref[...], 0.0)
    o_ref[0] = y.reshape(tile_h, wo_pad, cout_pad).astype(o_ref.dtype)


def conv_basic_forward(x_nchw, w_oikk, gamma, beta, running_mean, running_var,
                       *, stride=1, padding=1, eps=1e-5):
    """ConvBasic forward: Conv2d(KHxKW, stride=1, bias=False) -> BN(eval) -> ReLU.

    x_nchw: (N, Cin, H, W) float32. Returns (N, Cout, Ho, Wo) float32.
    """
    assert stride == 1, "this kernel implements the default stride=1 configuration"
    N, Cin, H, W = x_nchw.shape
    Cout, Cin_w, KH, KW = w_oikk.shape
    assert Cin == Cin_w

    Ho = H + 2 * padding - KH + 1
    Wo = W + 2 * padding - KW + 1
    assert Ho > 0 and Wo > 0, "kernel larger than padded input"

    LANE = 128
    SUB = 16                                    # bf16 sublane packing
    Cout_pad = _round_up(Cout, LANE)
    K = KH * KW * Cin
    K_pad = _round_up(K, LANE)
    Wo_pad = _round_up(Wo, SUB)                 # keeps (tile_h, Wo) -> M collapse layout-free
    Hp = H + 2 * padding
    Wp_pad = Wo_pad + KW - 1                    # >= W + 2*padding

    tile_h = _pick_tile_h(Ho, N)

    # NCHW -> NHWC, conv zero-pad (+ extra right pad to Wp_pad), cast to bf16.
    # The transposes stay as XLA glue because the PyTorch interface is NCHW.
    x_nhwc = jnp.transpose(x_nchw, (0, 2, 3, 1)).astype(jnp.float32)
    x_pad = jnp.pad(x_nhwc, ((0, 0), (padding, padding),
                             (padding, Wp_pad - W - padding), (0, 0)))
    x_pad = x_pad.astype(jnp.bfloat16)

    # Conv weight (Cout, Cin, KH, KW) -> im2col matrix (K, Cout), row order
    # (kh, kw, cin) matching the in-kernel patch, zero-padded to (K_pad, Cout_pad).
    w2d = jnp.transpose(w_oikk, (2, 3, 1, 0)).astype(jnp.float32).reshape(K, Cout)
    w2d = jnp.pad(w2d, ((0, K_pad - K), (0, Cout_pad - Cout))).astype(jnp.bfloat16)

    # Fold BN (inference) into per-output-channel scale/bias (f32), lane-padded.
    scale = (gamma / jnp.sqrt(running_var + eps)).astype(jnp.float32)
    bias = (beta - running_mean * scale).astype(jnp.float32)
    scale_p = jnp.pad(scale, (0, Cout_pad - Cout)).reshape(1, Cout_pad)
    bias_p = jnp.pad(bias, (0, Cout_pad - Cout)).reshape(1, Cout_pad)

    kernel = functools.partial(_conv_bn_relu_kernel,
                               kh_size=KH, kw_size=KW, tile_h=tile_h)

    # True (un-inflated) cost for the XLA scheduler.
    flops = int(2 * N * Ho * Wo * K * Cout)
    bytes_accessed = int(x_pad.size * 2 + K * Cout * 2 + 2 * Cout * 4
                         + N * Ho * Wo * Cout * 4)

    out_nhwc = pl.pallas_call(
        kernel,
        out_shape=jax.ShapeDtypeStruct((N, Ho, Wo_pad, Cout_pad), jnp.float32),
        grid=(N, Ho // tile_h),
        in_specs=[
            pl.BlockSpec((1, Hp, Wp_pad, Cin), lambda n, h: (n, 0, 0, 0)),
            pl.BlockSpec((K_pad, Cout_pad), lambda n, h: (0, 0)),
            pl.BlockSpec((1, Cout_pad), lambda n, h: (0, 0)),
            pl.BlockSpec((1, Cout_pad), lambda n, h: (0, 0)),
        ],
        out_specs=pl.BlockSpec((1, tile_h, Wo_pad, Cout_pad), lambda n, h: (n, h, 0, 0)),
        scratch_shapes=[pltpu.VMEM((tile_h, Wo_pad, K_pad), jnp.bfloat16)],
        compiler_params=pltpu.CompilerParams(
            dimension_semantics=("parallel", "parallel"),
            vmem_limit_bytes=_pick_vmem_limit(),
        ),
        cost_estimate=pl.CostEstimate(
            flops=flops, transcendentals=0, bytes_accessed=bytes_accessed),
    )(x_pad, w2d, scale_p, bias_p)

    # Drop spatial/channel padding, NHWC -> NCHW to match the PyTorch convention.
    out = out_nhwc[:, :, :Wo, :Cout]
    return jnp.transpose(out, (0, 3, 1, 2))


def _reference_forward(x_nchw, w_oikk, gamma, beta, running_mean, running_var,
                       eps=1e-5, padding=1):
    y = jax.lax.conv_general_dilated(
        x_nchw, w_oikk, window_strides=(1, 1),
        padding=((padding, padding), (padding, padding)),
        dimension_numbers=("NCHW", "OIHW", "NCHW"),
    )
    s = (gamma / jnp.sqrt(running_var + eps)).reshape(1, -1, 1, 1)
    b = (beta - running_mean * gamma / jnp.sqrt(running_var + eps)).reshape(1, -1, 1, 1)
    return jnp.maximum(y * s + b, 0.0)


if __name__ == "__main__":
    key = jax.random.PRNGKey(0)
    k_x, k_w, k_g, k_b, k_m, k_v = jax.random.split(key, 6)

    N, Cin, Cout, H, W = 2, 4, 8, 16, 16
    KH = KW = 3

    x = jax.random.normal(k_x, (N, Cin, H, W), dtype=jnp.float32)
    # Conv2d weight, PyTorch layout (Cout, Cin, KH, KW); deterministic init.
    w = jax.random.normal(k_w, (Cout, Cin, KH, KW), dtype=jnp.float32) * 0.1
    # BatchNorm2d parameters / running stats (deterministic, non-trivial).
    gamma = 1.0 + 0.1 * jax.random.normal(k_g, (Cout,), dtype=jnp.float32)
    beta = 0.1 * jax.random.normal(k_b, (Cout,), dtype=jnp.float32)
    running_mean = 0.1 * jax.random.normal(k_m, (Cout,), dtype=jnp.float32)
    running_var = 1.0 + 0.1 * jax.random.uniform(k_v, (Cout,), dtype=jnp.float32)

    out = conv_basic_forward(x, w, gamma, beta, running_mean, running_var)
    out = jax.block_until_ready(out)

    ref = _reference_forward(x, w, gamma, beta, running_mean, running_var)
    assert out.shape == (N, Cout, H, W)
    # bf16 conv operands vs f32 reference -> tolerance loosened accordingly.
    assert jnp.allclose(out, ref, atol=3e-2, rtol=3e-2), "mismatch vs JAX reference"

    print("KERNEL_OK")
</pallas_src>

<mosaic_0001>
module attributes {stable_mosaic.version = 11 : i64} {
  func.func @_conv_bn_relu_kernel(%arg0: i32, %arg1: i32, %arg2: memref<1x18x18x4xbf16, #tpu.memory_space<vmem>>, %arg3: memref<128x128xbf16, #tpu.memory_space<vmem>>, %arg4: memref<1x128xf32, #tpu.memory_space<vmem>>, %arg5: memref<1x128xf32, #tpu.memory_space<vmem>>, %arg6: memref<1x16x16x128xf32, #tpu.memory_space<vmem>>, %arg7: memref<16x16x128xbf16, #tpu.memory_space<vmem>>) attributes {dimension_semantics = [#tpu.dimension_semantics<parallel>, #tpu.dimension_semantics<parallel>], iteration_bounds = array<i64: 2, 1>, scalar_prefetch = 0 : i64, scratch_operands = 1 : i64, tpu.core_type = #tpu.core_type<tc>, window_params = [{transform_indices = @transform_0, window_bounds = array<i64: 1, 18, 18, 4>}, {pipeline_mode = #tpu.pipeline_mode<synchronous>, transform_indices = @transform_1, window_bounds = array<i64: 128, 128>}, {pipeline_mode = #tpu.pipeline_mode<synchronous>, transform_indices = @transform_2, window_bounds = array<i64: 1, 128>}, {pipeline_mode = #tpu.pipeline_mode<synchronous>, transform_indices = @transform_3, window_bounds = array<i64: 1, 128>}, {transform_indices = @transform_4, window_bounds = array<i64: 1, 16, 16, 128>}]} {
    %c16_i32 = arith.constant 16 : i32
    %0 = arith.muli %arg1, %c16_i32 : i32
    %1 = tpu.assume_multiple %0, 16 : i32
    %c0 = arith.constant 0 : index
    %2 = arith.index_cast %1 : i32 to index
    %c0_0 = arith.constant 0 : index
    %c0_1 = arith.constant 0 : index
    %3 = vector.load %arg2[%c0, %2, %c0_0, %c0_1] : memref<1x18x18x4xbf16, #tpu.memory_space<vmem>>, vector<1x18x18x4xbf16>
    %4 = vector.shape_cast %3 : vector<1x18x18x4xbf16> to vector<18x18x4xbf16>
    %cst = arith.constant 0.000000e+00 : bf16
    %5 = vector.broadcast %cst : bf16 to vector<16x16x92xbf16>
    %c0_2 = arith.constant 0 : index
    %c0_3 = arith.constant 0 : index
    %c36 = arith.constant 36 : index
    %6 = vector.load %arg7[%c0_2, %c0_3, %c36] : memref<16x16x128xbf16, #tpu.memory_space<vmem>>, vector<16x16x92xbf16>
    tpu.vector_store %arg7[%c0_2, %c0_3, %c36], %5 {strides = array<i32>} : memref<16x16x128xbf16, #tpu.memory_space<vmem>>, vector<16x16x92xbf16>,
    %7 = vector.extract_strided_slice %4 {offsets = [0, 0, 0], sizes = [16, 18, 4], strides = [1, 1, 1]} : vector<18x18x4xbf16> to vector<16x18x4xbf16>
    %8 = vector.extract_strided_slice %7 {offsets = [0, 0, 0], sizes = [16, 16, 4], strides = [1, 1, 1]} : vector<16x18x4xbf16> to vector<16x16x4xbf16>
    %c0_4 = arith.constant 0 : index
    %c0_5 = arith.constant 0 : index
    %c0_6 = arith.constant 0 : index
    %9 = vector.load %arg7[%c0_4, %c0_5, %c0_6] : memref<16x16x128xbf16, #tpu.memory_space<vmem>>, vector<16x16x4xbf16>
    tpu.vector_store %arg7[%c0_4, %c0_5, %c0_6], %8 {strides = array<i32>} : memref<16x16x128xbf16, #tpu.memory_space<vmem>>, vector<16x16x4xbf16>,
    %10 = vector.extract_strided_slice %7 {offsets = [0, 1, 0], sizes = [16, 16, 4], strides = [1, 1, 1]} : vector<16x18x4xbf16> to vector<16x16x4xbf16>
    %c0_7 = arith.constant 0 : index
    %c0_8 = arith.constant 0 : index
    %c4 = arith.constant 4 : index
    %11 = vector.load %arg7[%c0_7, %c0_8, %c4] : memref<16x16x128xbf16, #tpu.memory_space<vmem>>, vector<16x16x4xbf16>
    tpu.vector_store %arg7[%c0_7, %c0_8, %c4], %10 {strides = array<i32>} : memref<16x16x128xbf16, #tpu.memory_space<vmem>>, vector<16x16x4xbf16>,
    %12 = vector.extract_strided_slice %7 {offsets = [0, 2, 0], sizes = [16, 16, 4], strides = [1, 1, 1]} : vector<16x18x4xbf16> to vector<16x16x4xbf16>
    %c0_9 = arith.constant 0 : index
    %c0_10 = arith.constant 0 : index
    %c8 = arith.constant 8 : index
    %13 = vector.load %arg7[%c0_9, %c0_10, %c8] : memref<16x16x128xbf16, #tpu.memory_space<vmem>>, vector<16x16x4xbf16>
    tpu.vector_store %arg7[%c0_9, %c0_10, %c8], %12 {strides = array<i32>} : memref<16x16x128xbf16, #tpu.memory_space<vmem>>, vector<16x16x4xbf16>,
    %14 = vector.extract_strided_slice %4 {offsets = [1, 0, 0], sizes = [16, 18, 4], strides = [1, 1, 1]} : vector<18x18x4xbf16> to vector<16x18x4xbf16>
    %15 = vector.extract_strided_slice %14 {offsets = [0, 0, 0], sizes = [16, 16, 4], strides = [1, 1, 1]} : vector<16x18x4xbf16> to vector<16x16x4xbf16>
    %c0_11 = arith.constant 0 : index
    %c0_12 = arith.constant 0 : index
    %c12 = arith.constant 12 : index
    %16 = vector.load %arg7[%c0_11, %c0_12, %c12] : memref<16x16x128xbf16, #tpu.memory_space<vmem>>, vector<16x16x4xbf16>
    tpu.vector_store %arg7[%c0_11, %c0_12, %c12], %15 {strides = array<i32>} : memref<16x16x128xbf16, #tpu.memory_space<vmem>>, vector<16x16x4xbf16>,
    %17 = vector.extract_strided_slice %14 {offsets = [0, 1, 0], sizes = [16, 16, 4], strides = [1, 1, 1]} : vector<16x18x4xbf16> to vector<16x16x4xbf16>
    %c0_13 = arith.constant 0 : index
    %c0_14 = arith.constant 0 : index
    %c16 = arith.constant 16 : index
    %18 = vector.load %arg7[%c0_13, %c0_14, %c16] : memref<16x16x128xbf16, #tpu.memory_space<vmem>>, vector<16x16x4xbf16>
    tpu.vector_store %arg7[%c0_13, %c0_14, %c16], %17 {strides = array<i32>} : memref<16x16x128xbf16, #tpu.memory_space<vmem>>, vector<16x16x4xbf16>,
    %19 = vector.extract_strided_slice %14 {offsets = [0, 2, 0], sizes = [16, 16, 4], strides = [1, 1, 1]} : vector<16x18x4xbf16> to vector<16x16x4xbf16>
    %c0_15 = arith.constant 0 : index
    %c0_16 = arith.constant 0 : index
    %c20 = arith.constant 20 : index
    %20 = vector.load %arg7[%c0_15, %c0_16, %c20] : memref<16x16x128xbf16, #tpu.memory_space<vmem>>, vector<16x16x4xbf16>
    tpu.vector_store %arg7[%c0_15, %c0_16, %c20], %19 {strides = array<i32>} : memref<16x16x128xbf16, #tpu.memory_space<vmem>>, vector<16x16x4xbf16>,
    %21 = vector.extract_strided_slice %4 {offsets = [2, 0, 0], sizes = [16, 18, 4], strides = [1, 1, 1]} : vector<18x18x4xbf16> to vector<16x18x4xbf16>
    %22 = vector.extract_strided_slice %21 {offsets = [0, 0, 0], sizes = [16, 16, 4], strides = [1, 1, 1]} : vector<16x18x4xbf16> to vector<16x16x4xbf16>
    %c0_17 = arith.constant 0 : index
    %c0_18 = arith.constant 0 : index
    %c24 = arith.constant 24 : index
    %23 = vector.load %arg7[%c0_17, %c0_18, %c24] : memref<16x16x128xbf16, #tpu.memory_space<vmem>>, vector<16x16x4xbf16>
    tpu.vector_store %arg7[%c0_17, %c0_18, %c24], %22 {strides = array<i32>} : memref<16x16x128xbf16, #tpu.memory_space<vmem>>, vector<16x16x4xbf16>,
    %24 = vector.extract_strided_slice %21 {offsets = [0, 1, 0], sizes = [16, 16, 4], strides = [1, 1, 1]} : vector<16x18x4xbf16> to vector<16x16x4xbf16>
    %c0_19 = arith.constant 0 : index
    %c0_20 = arith.constant 0 : index
    %c28 = arith.constant 28 : index
    %25 = vector.load %arg7[%c0_19, %c0_20, %c28] : memref<16x16x128xbf16, #tpu.memory_space<vmem>>, vector<16x16x4xbf16>
    tpu.vector_store %arg7[%c0_19, %c0_20, %c28], %24 {strides = array<i32>} : memref<16x16x128xbf16, #tpu.memory_space<vmem>>, vector<16x16x4xbf16>,
    %26 = vector.extract_strided_slice %21 {offsets = [0, 2, 0], sizes = [16, 16, 4], strides = [1, 1, 1]} : vector<16x18x4xbf16> to vector<16x16x4xbf16>
    %c0_21 = arith.constant 0 : index
    %c0_22 = arith.constant 0 : index
    %c32 = arith.constant 32 : index
    %27 = vector.load %arg7[%c0_21, %c0_22, %c32] : memref<16x16x128xbf16, #tpu.memory_space<vmem>>, vector<16x16x4xbf16>
    tpu.vector_store %arg7[%c0_21, %c0_22, %c32], %26 {strides = array<i32>} : memref<16x16x128xbf16, #tpu.memory_space<vmem>>, vector<16x16x4xbf16>,
    %c0_23 = arith.constant 0 : index
    %c0_24 = arith.constant 0 : index
    %c0_25 = arith.constant 0 : index
    %28 = vector.load %arg7[%c0_23, %c0_24, %c0_25] : memref<16x16x128xbf16, #tpu.memory_space<vmem>>, vector<16x16x128xbf16>
    %29 = vector.shape_cast %28 : vector<16x16x128xbf16> to vector<256x128xbf16>
    %c0_26 = arith.constant 0 : index
    %c0_27 = arith.constant 0 : index
    %30 = vector.load %arg3[%c0_26, %c0_27] : memref<128x128xbf16, #tpu.memory_space<vmem>>, vector<128x128xbf16>
    %cst_28 = arith.constant dense<0.000000e+00> : vector<256x128xf32>
    %31 = tpu.matmul %29, %30, %cst_28 {dimension_numbers = #tpu.dot_dimension_numbers<[1], [0], [0], [1], [0, 0, 1, 1], [], []>} : vector<256x128xbf16>, vector<128x128xbf16>, vector<256x128xf32> -> vector<256x128xf32>
    %c0_29 = arith.constant 0 : index
    %c0_30 = arith.constant 0 : index
    %32 = vector.load %arg4[%c0_29, %c0_30] : memref<1x128xf32, #tpu.memory_space<vmem>>, vector<1x128xf32>
    %33 = vector.broadcast %32 : vector<1x128xf32> to vector<256x128xf32>
    %34 = arith.mulf %31, %33 : vector<256x128xf32>
    %c0_31 = arith.constant 0 : index
    %c0_32 = arith.constant 0 : index
    %35 = vector.load %arg5[%c0_31, %c0_32] : memref<1x128xf32, #tpu.memory_space<vmem>>, vector<1x128xf32>
    %36 = vector.broadcast %35 : vector<1x128xf32> to vector<256x128xf32>
    %37 = arith.addf %34, %36 : vector<256x128xf32>
    %cst_33 = arith.constant 0.000000e+00 : f32
    %38 = vector.broadcast %cst_33 : f32 to vector<256x128xf32>
    %39 = arith.maximumf %37, %38 : vector<256x128xf32>
    %40 = vector.shape_cast %39 : vector<256x128xf32> to vector<16x16x128xf32>
    %c0_34 = arith.constant 0 : index
    %c0_35 = arith.constant 0 : index
    %c0_36 = arith.constant 0 : index
    %c0_37 = arith.constant 0 : index
    %41 = vector.load %arg6[%c0_34, %c0_35, %c0_36, %c0_37] : memref<1x16x16x128xf32, #tpu.memory_space<vmem>>, vector<1x16x16x128xf32>
    %42 = vector.shape_cast %41 : vector<1x16x16x128xf32> to vector<16x16x128xf32>
    %43 = vector.shape_cast %40 : vector<16x16x128xf32> to vector<1x16x16x128xf32>
    tpu.vector_store %arg6[%c0_34, %c0_35, %c0_36, %c0_37], %43 {strides = array<i32>} : memref<1x16x16x128xf32, #tpu.memory_space<vmem>>, vector<1x16x16x128xf32>,
    return
  }
  func.func @transform_0(%arg0: i32, %arg1: i32) -> (i32, i32, i32, i32) {
    %c0_i32 = arith.constant 0 : i32
    %c0_i32_0 = arith.constant 0 : i32
    %c0_i32_1 = arith.constant 0 : i32
    %c0_i32_2 = arith.constant 0 : i32
    return %arg0, %c0_i32, %c0_i32_0, %c0_i32_1 : i32, i32, i32, i32
  }
  func.func @transform_1(%arg0: i32, %arg1: i32) -> (i32, i32) {
    %c0_i32 = arith.constant 0 : i32
    %c0_i32_0 = arith.constant 0 : i32
    %c0_i32_1 = arith.constant 0 : i32
    return %c0_i32, %c0_i32_0 : i32, i32
  }
  func.func @transform_2(%arg0: i32, %arg1: i32) -> (i32, i32) {
    %c0_i32 = arith.constant 0 : i32
    %c0_i32_0 = arith.constant 0 : i32
    %c0_i32_1 = arith.constant 0 : i32
    return %c0_i32, %c0_i32_0 : i32, i32
  }
  func.func @transform_3(%arg0: i32, %arg1: i32) -> (i32, i32) {
    %c0_i32 = arith.constant 0 : i32
    %c0_i32_0 = arith.constant 0 : i32
    %c0_i32_1 = arith.constant 0 : i32
    return %c0_i32, %c0_i32_0 : i32, i32
  }
  func.func @transform_4(%arg0: i32, %arg1: i32) -> (i32, i32, i32, i32) {
    %c0_i32 = arith.constant 0 : i32
    %c0_i32_0 = arith.constant 0 : i32
    %c0_i32_1 = arith.constant 0 : i32
    return %arg0, %arg1, %c0_i32, %c0_i32_0 : i32, i32, i32, i32
  }
}

</mosaic_0001>

<bundles_post_ra>
// kernel: tpu_custom_call.1
= control target key start
LH: loop header
LB: loop body
LE: loop exit
PB: predicated region body
PF: predicated region fallthrough
CT: control target
= control target key end

     0   :  { %9 = vsyncpa [#allocation4], 0  ;;  %s4623_s0 = inlined_call_operand.vmem [shape: bf16[2,18,18,4], index: 0, kind: input, shape index: {}]   ;;  %s4624_s1 = inlined_call_operand.vmem [shape: bf16[128,128], index: 1, kind: input, shape index: {}]   ;;  %s4625_s2 = inlined_call_operand.vmem [shape: f32[1,128], index: 2, kind: input, shape index: {}]   ;;  %s4626_s3 = inlined_call_operand.vmem [shape: f32[1,128], index: 3, kind: input, shape index: {}]   ;;  %s4627_s4 = inlined_call_operand.hbm [shape: f32[2,16,16,128], index: 4, kind: output, shape index: {}]  }
   0x1   :  { %11 = vsyncpa [#allocation4 + $0x1], 0  ;;  %s2924_s15 = smov 0   ;;  %s2926_s16 = smov 0  }
   0x2   :  { %s2928_s17 = smov 0   ;;  %s2930_s18 = smov 0  }
   0x3   :  { %s2932_s19 = smov 0   ;;  %s2934_s20 = smov 0  }
   0x4 LB: > { %s2573_s21 = sadd.s32 4294967295, %s2886_s20   ;;  %s2574_s22 = sadd.s32 4294967294, %s2886_s20   ;;  %s2886_s20 = sphi %s2934_s20, %s17_s20   ;;  %s2882_s19 = sphi %s2932_s19, %s4826_s19   ;;  %s2878_s18 = sphi %s2930_s18, %s4825_s18   ;;  %s2874_s17 = sphi %s2928_s17, %s4824_s17   ;;  %s2870_s16 = sphi %s2926_s16, %s4823_s16   ;;  %s2866_s15 = sphi %s2924_s15, %s4822_s15  }
   0x5   : > { %s29_s23 = sadd.s32 1, %s2882_s19  ;;  %s127_s24 = sadd.s32 1, %s2874_s17 }
   0x6   : > { %p31_p0 = scmp.ge.s32.totalorder %s29_s23, 2  ;;  %p137_p1 = scmp.ne.s32.totalorder %s2874_s17, %s2870_s16 }
   0x7   : > { %p138_p2 = scmp.eq.s32.totalorder %s2573_s21, 1  ;;  %p143_p3 = scmp.ne.s32.totalorder %s2870_s16, %s2866_s15 }
   0x8   : > { %s4828_s23 = smov (%p31_p0, %s29_s23), 0  ;;  %p144_p5 = scmp.eq.s32.totalorder %s2574_s22, 1 }
   0x9   : > { %p2964_p4 = por %p138_p2, %p137_p1  ;;  %s122_s26 = ssub.s32 %s2882_s19, %s4828_s23 }
   0xa   : > { %p2577_p6 = scmp.ge.s32.totalorder %s2886_s20, 1  ;;  %p125_p7 = scmp.eq.s32.totalorder %s122_s26, 0 }
   0xb   : > { %p2971_p8 = por %p144_p5, %p143_p3  ;;  %p179_p9 = scmp.lt.s32.totalorder %s2886_s20, 3 }
   0xc   : > { %s2977_s28 = scalar_select %p125_p7, %s2874_s17, %s127_s24  }
   0xd   : > { %p180_p10 = pnand %p2577_p6, %p179_p9 }
   0xf   : > { %183 = sbr.rel (%p180_p10) target bundleno = 906 (0x38a), region = 36 }
  0x14   : > { %p205_p11 = scmp.lt.s32.totalorder %s2878_s18, 1  ;;  %vm336_vm0 = vsmask.f32 3328  ;;  %vm337_vm1 = vsmask.f32 7440  ;;  %vm270_vm2 = vcmask 1043744  }
  0x15   : > { %v2888_v0 = vmov 0   ;;  %vm303_vm3 = vcmask 27648   ;;  %vm3068_vm4 = vmor %vm336_vm0, %vm337_vm1  ;;  %v4720_v29 = vmov 0  ;;  %s2889_s8 = smov 4   ;;  %vm900_vm5 = vcmask 1042432   ;;  %s2890_s9 = smov 8  }
  0x16   : > { %s2981_s29 = scalar_select %p205_p11, %s2878_s18, 1  ;;  %273 = vst.msk [vmem:[#allocation2 + $0x8] sm:$0xf] %vm270_vm2, %v2888_v0  ;;  %271 = vst.msk [vmem:[#allocation2] sm:$0xf] %vm270_vm2, %v2888_v0  ;;  %v4721_v29 = vsel %vm3068_vm4, 4294967295, %v4720_v29 }
  0x17   : > { %272 = vst.msk [vmem:[#allocation2 + $0x4] sm:$0xf] %vm270_vm2, %v2888_v0  ;;  %274 = vst.msk [vmem:[#allocation2 + $0xc] sm:$0xf] %vm270_vm2, %v2888_v0  ;;  %vm901_vm6 = vcmask 1046532   ;;  %vm819_vm8 = vcmask 60448  }
  0x18   : > { %275 = vst.msk [vmem:[#allocation2 + $0x10] sm:$0xf] %vm270_vm2, %v2888_v0  ;;  %276 = vst.msk [vmem:[#allocation2 + $0x14] sm:$0xf] %vm270_vm2, %v2888_v0  ;;  %s2718_s30 = smul.u32 216, %s2981_s29  ;;  %s2891_s10 = smov 12  }
  0x19   : > { %277 = vst.msk [vmem:[#allocation2 + $0x18] sm:$0xf] %vm270_vm2, %v2888_v0  ;;  %278 = vst.msk [vmem:[#allocation2 + $0x1c] sm:$0xf] %vm270_vm2, %v2888_v0  ;;  %vm1111_vm9 = vcmask 93248   ;;  %s2892_s11 = smov 16  }
  0x1a   : > { %279 = vst.msk [vmem:[#allocation2 + $0x20] sm:$0xf] %vm270_vm2, %v2888_v0  ;;  %280 = vst.msk [vmem:[#allocation2 + $0x24] sm:$0xf] %vm270_vm2, %v2888_v0  ;;  %s3019_s7 = scalar_lea.vmem %s4623_s0, %s2718_s30  ;;  %s2893_s12 = smov 20   ;;  %vm1242_vm10 = vcmask 126048  }
  0x1b   : > { %281 = vst.msk [vmem:[#allocation2 + $0x28] sm:$0xf] %vm270_vm2, %v2888_v0  ;;  %282 = vst.msk [vmem:[#allocation2 + $0x2c] sm:$0xf] %vm270_vm2, %v2888_v0  ;;  %v3022_v1 = vld [vmem:[%s3019_s7 + $0xc] sm:$0xf] }
  0x1c   : > { %283 = vst.msk [vmem:[#allocation2 + $0x30] sm:$0xf] %vm270_vm2, %v2888_v0  ;;  %284 = vst.msk [vmem:[#allocation2 + $0x34] sm:$0xf] %vm270_vm2, %v2888_v0  ;;  %v3025_v2 = vld [vmem:[%s3019_s7 + $0x10] sm:$0xf] }
  0x1d   : > { %285 = vst.msk [vmem:[#allocation2 + $0x38] sm:$0xf] %vm270_vm2, %v2888_v0  ;;  %286 = vst.msk [vmem:[#allocation2 + $0x3c] sm:$0xf] %vm270_vm2, %v2888_v0  ;;  %v3028_v3 = vld [vmem:[%s3019_s7] sm:$0xf] }
  0x1e   : > { %287 = vst.msk [vmem:[#allocation2 + $0x40] sm:$0xf] %vm270_vm2, %v2888_v0  ;;  %288 = vst.msk [vmem:[#allocation2 + $0x44] sm:$0xf] %vm270_vm2, %v2888_v0  ;;  %v364_v4 = vshrl.u32 %v3022_v1, 16  ;;  %v367_v5 = vshll.u32 %v3022_v1, 16 }
  0x1f   : > { %289 = vst.msk [vmem:[#allocation2 + $0x48] sm:$0xf] %vm270_vm2, %v2888_v0  ;;  %290 = vst.msk [vmem:[#allocation2 + $0x4c] sm:$0xf] %vm270_vm2, %v2888_v0  ;;  %v373_v6 = vshll.u32 %v3025_v2, 16  ;;  %v340_v8 = vshrl.u32 %v3028_v3, 16 }
  0x20   : > { %291 = vst.msk [vmem:[#allocation2 + $0x50] sm:$0xf] %vm270_vm2, %v2888_v0  ;;  %292 = vst.msk [vmem:[#allocation2 + $0x54] sm:$0xf] %vm270_vm2, %v2888_v0  ;;  %v3034_v7 = vld [vmem:[%s3019_s7 + $0x4] sm:$0xf] }
  0x21   : > { %293 = vst.msk [vmem:[#allocation2 + $0x58] sm:$0xf] %vm270_vm2, %v2888_v0  ;;  %294 = vst.msk [vmem:[#allocation2 + $0x5c] sm:$0xf] %vm270_vm2, %v2888_v0  ;;  %v343_v9 = vshll.u32 %v3028_v3, 16  ;;  %v349_v10 = vshll.u32 %v3034_v7, 16 }
  0x22   : > { %295 = vst.msk [vmem:[#allocation2 + $0x60] sm:$0xf] %vm270_vm2, %v2888_v0  ;;  %296 = vst.msk [vmem:[#allocation2 + $0x64] sm:$0xf] %vm270_vm2, %v2888_v0  ;;  %v3046_v11 = vld [vmem:[%s3019_s7 + $0x14] sm:$0x1] }
  0x23   : > { %297 = vst.msk [vmem:[#allocation2 + $0x68] sm:$0xf] %vm270_vm2, %v2888_v0  ;;  %298 = vst.msk [vmem:[#allocation2 + $0x6c] sm:$0xf] %vm270_vm2, %v2888_v0  ;;  %v377_v12 = vshrl.u32 %v3025_v2, 16  ;;  %v353_v13 = vshrl.u32 %v3034_v7, 16 }
  0x24   : > { %299 = vst.msk [vmem:[#allocation2 + $0x70] sm:$0xf] %vm270_vm2, %v2888_v0  ;;  %300 = vst.msk [vmem:[#allocation2 + $0x74] sm:$0xf] %vm270_vm2, %v2888_v0  ;;  %v366_v14 = vrot.slane %v364_v4, 4  ;;  %v369_v15 = vrot.slane %v367_v5, 5 }
  0x25   : > { %301 = vst.msk [vmem:[#allocation2 + $0x78] sm:$0xf] %vm270_vm2, %v2888_v0  ;;  %302 = vst.msk [vmem:[#allocation2 + $0x7c] sm:$0xf] %vm270_vm2, %v2888_v0  ;;  %v375_v16 = vrot.slane %v373_v6, 5  ;;  %v342_v17 = vrot.slane %v340_v8, 4 }
  0x26   : > { %306 = vst.msk [vmem:[#allocation2 + $0x8] sm:$0xf] %vm303_vm3, %v3022_v1  ;;  %304 = vst.msk [vmem:[#allocation2] sm:$0xf] %vm303_vm3, %v3028_v3  ;;  %v3053_v18 = vld [vmem:[%s3019_s7 + $0x8] sm:$0x1]  ;;  %v370_v24 = vor.u32 %v369_v15, %v366_v14 }
  0x27   : > { %307 = vst.msk [vmem:[#allocation2 + $0xc] sm:$0xf] %vm303_vm3, %v3025_v2  ;;  %305 = vst.msk [vmem:[#allocation2 + $0x4] sm:$0xf] %vm303_vm3, %v3034_v7  ;;  %v345_v19 = vrot.slane %v343_v9, 5  ;;  %v351_v20 = vrot.slane %v349_v10, 5 }
  0x28   : > { %v379_v21 = vrot.slane %v377_v12, 4  ;;  %v383_v22 = vshll.u32 %v3046_v11, 16  ;;  %v3057_v23 = vld [vmem:[%s3019_s7 + $0x1c] sm:$0xf]  ;;  %v355_v25 = vrot.slane %v353_v13, 4  ;;  %v359_v26 = vshll.u32 %v3053_v18, 16  ;;  %vm3487_vm7 = vmor %vm900_vm5, %vm901_vm6 }
  0x29   : > { %v3061_v27 = vld [vmem:[%s3019_s7 + $0x20] sm:$0x1]  ;;  %v397_v28 = vshll.u32 %v3057_v23, 16  ;;  %309 = vst.msk [vmem:[#allocation2 + $0x14] sm:$0xf] %vm303_vm3, %v3057_v23  ;;  %4722 = vst [vmem:[#allocation6_spill] sm:$0xff] %v4721_v29  ;;  %v346_v30 = vor.u32 %v345_v19, %v342_v17 }
  0x2a   : > { %v380_v31 = vor.u32 %v379_v21, %v375_v16  ;;  %v385_v32 = vrot.slane %v383_v22, 5  ;;  %v401_v33 = vshrl.u32 %v3057_v23, 16  ;;  %v3074_v34 = vld [vmem:[%s3019_s7 + $0x18] sm:$0xf]  ;;  %v3077_v35 = vld [vmem:[%s3019_s7 + $0x28] sm:$0xf]  ;;  %v356_v37 = vor.u32 %v355_v25, %v351_v20 }
  0x2b   : > { %v371_v36 = vrot.slane %v370_v24, 4  ;;  %v361_v38 = vrot.slane %v359_v26, 5  ;;  %v399_v39 = vrot.slane %v397_v28, 5  ;;  %v3080_v40 = vld [vmem:[%s3019_s7 + $0x2c] sm:$0x1]  ;;  %v347_v41 = vrot.slane %v346_v30, 4 }
  0x2c   : > { %308 = vst.msk [vmem:[#allocation2 + $0x10] sm:$0xf] %vm303_vm3, %v3074_v34  ;;  %311 = vst.msk [vmem:[#allocation2 + $0x1c] sm:$0xf] %vm303_vm3, %v3077_v35  ;;  %v381_v42 = vrot.slane %v380_v31, 4  ;;  %v403_v43 = vrot.slane %v401_v33, 4 }
  0x2d   : > { %v407_v44 = vshll.u32 %v3061_v27, 16  ;;  %v3088_v45 = vld [vmem:[%s3019_s7 + $0x24] sm:$0xf]  ;;  %v3092_v46 = vsel %vm3068_vm4, %v371_v36, %v375_v16  ;;  %v357_v47 = vrot.slane %v356_v37, 4  ;;  %v388_v48 = vshrl.u32 %v3074_v34, 16  ;;  %s2894_s13 = smov 24  }
  0x2e   : > { %4723 = vst [vmem:[#allocation7_spill] sm:$0xff] %v3092_v46  ;;  %v391_v49 = vshll.u32 %v3074_v34, 16  ;;  %v3097_v50 = vld [vmem:[%s3019_s7 + $0x34] sm:$0xf]  ;;  %310 = vst.msk [vmem:[#allocation2 + $0x18] sm:$0xf] %vm303_vm3, %v3088_v45  ;;  %727 = vrot.lane.b32.xlu1 %v3092_v46, %s2889_s8  ;;  %v352_v51 = vsel %vm3068_vm4, %v347_v41, %v351_v20  ;;  %v3107_v52 = vsel %vm3068_vm4, %v381_v42, %v385_v32 }
  0x2f   : > { %4724 = vst [vmem:[#allocation8_spill] sm:$0xff] %v3107_v52  ;;  %v404_v53 = vor.u32 %v403_v43, %v399_v39  ;;  %v409_v54 = vrot.slane %v407_v44, 5  ;;  %v3110_v55 = vld [vmem:[%s3019_s7 + $0x30] sm:$0xf]  ;;  %313 = vst.msk [vmem:[#allocation2 + $0x24] sm:$0xf] %vm303_vm3, %v3097_v50  ;;  %723 = vrot.lane.b32.xlu0 %v352_v51, %s2889_s8  ;;  %v362_v56 = vsel %vm3068_vm4, %v357_v47, %v361_v38 }
  0x30   : > { %v390_v57 = vrot.slane %v388_v48, 4  ;;  %v393_v58 = vrot.slane %v391_v49, 5  ;;  %v421_v59 = vshll.u32 %v3077_v35, 16  ;;  %v3119_v60 = vld [vmem:[%s3019_s7 + $0x40] sm:$0xf]  ;;  %v425_v62 = vshrl.u32 %v3077_v35, 16 }
  0x31   : > { %312 = vst.msk [vmem:[#allocation2 + $0x20] sm:$0xf] %vm303_vm3, %v3110_v55  ;;  %v405_v61 = vrot.slane %v404_v53, 4  ;;  %v431_v63 = vshll.u32 %v3080_v40, 16  ;;  %v412_v0 = vshrl.u32 %v3088_v45, 16  ;;  %v415_v8 = vshll.u32 %v3088_v45, 16 }
  0x32   : > { %v3127_v4 = vld [vmem:[%s3019_s7 + $0x38] sm:$0x1]  ;;  %315 = vst.msk [vmem:[#allocation2 + $0x2c] sm:$0xf] %vm303_vm3, %v3119_v60  ;;  %v394_v5 = vor.u32 %v393_v58, %v390_v57  ;;  %v423_v6 = vrot.slane %v421_v59, 5  ;;  %v445_v9 = vshll.u32 %v3097_v50, 16  ;;  %729 = vrot.lane.b32.xlu1 %v3107_v52, %s2889_s8 }
  0x33   : > { %v3134_v10 = vld [vmem:[%s3019_s7 + $0x3c] sm:$0xf]  ;;  %v3140_v12 = vsel %vm3068_vm4, %v405_v61, %v409_v54  ;;  %v427_v13 = vrot.slane %v425_v62, 4  ;;  %v433_v14 = vrot.slane %v431_v63, 5  ;;  %v414_v15 = vrot.slane %v412_v0, 4  ;;  %725 = vrot.lane.b32.xlu0 %v362_v56, %s2889_s8  ;;  %s2895_s30 = smov 28  }
  0x34   : > { %4725 = vst [vmem:[#allocation9_spill] sm:$0xff] %v3140_v12  ;;  %v3143_v16 = vld [vmem:[%s3019_s7 + $0x4c] sm:$0xf]  ;;  %314 = vst.msk [vmem:[#allocation2 + $0x28] sm:$0xf] %vm303_vm3, %v3134_v10  ;;  %v395_v17 = vrot.slane %v394_v5, 4 }
  0x35   : > { %v417_v19 = vrot.slane %v415_v8, 5  ;;  %v447_v20 = vrot.slane %v445_v9, 5  ;;  %v449_v21 = vshrl.u32 %v3097_v50, 16  ;;  %317 = vst.msk [vmem:[#allocation2 + $0x34] sm:$0xf] %vm303_vm3, %v3143_v16  ;;  %v428_v22 = vor.u32 %v427_v13, %v423_v6  ;;  %s2896_s26 = smov 32  }
  0x36   : > { %v455_v24 = vshll.u32 %v3127_v4, 16  ;;  %v436_v25 = vshrl.u32 %v3110_v55, 16  ;;  %v439_v26 = vshll.u32 %v3110_v55, 16  ;;  %v3155_v28 = vld [vmem:[%s3019_s7 + $0x48] sm:$0xf]  ;;  %v3159_v30 = vsel %vm3068_vm4, %v395_v17, %v399_v39  ;;  %733 = vrot.lane.b32.xlu1 %v3140_v12, %s2889_s8  ;;  %s2897_s29 = smov [#allocation3]  }
  0x37   : > { %4726 = vst [vmem:[#allocation10_spill] sm:$0xff] %v3159_v30  ;;  %v418_v31 = vor.u32 %v417_v19, %v414_v15  ;;  %v451_v32 = vrot.slane %v449_v21, 4  ;;  %v3162_v33 = vld [vmem:[%s3019_s7 + $0x44] sm:$0x1]  ;;  %v469_v36 = vshll.u32 %v3119_v60, 16  ;;  %v429_v38 = vrot.slane %v428_v22, 4  ;;  %731 = vrot.lane.b32.xlu0 %v3159_v30, %s2889_s8 }
  0x38   : > { %v3166_v37 = vld [vmem:[%s3019_s7 + $0x58] sm:$0xf]  ;;  %316 = vst.msk [vmem:[#allocation2 + $0x30] sm:$0xf] %vm303_vm3, %v3155_v28  ;;  %v457_v41 = vrot.slane %v455_v24, 5  ;;  %v438_v39 = vrot.slane %v436_v25, 4 }
  0x39   : > { %v441_v42 = vrot.slane %v439_v26, 5  ;;  %v3173_v43 = vld [vmem:[%s3019_s7 + $0x54] sm:$0xf]  ;;  %319 = vst.msk [vmem:[#allocation2 + $0x3c] sm:$0xf] %vm303_vm3, %v3166_v37  ;;  %v419_v44 = vrot.slane %v418_v31, 4  ;;  %v452_v47 = vor.u32 %v451_v32, %v447_v20  ;;  %v3189_v53 = vsel %vm3068_vm4, %v429_v38, %v433_v14 }
  0x3a   : > { %v3179_v48 = vrot.slane %v469_v36, 5  ;;  %v473_v49 = vshrl.u32 %v3119_v60, 16  ;;  %v3183_v51 = vld [vmem:[%s3019_s7 + $0x64] sm:$0xf]  ;;  %318 = vst.msk [vmem:[#allocation2 + $0x38] sm:$0xf] %vm303_vm3, %v3173_v43  ;;  %737 = vrot.lane.b32.xlu1 %v3189_v53, %s2889_s8 }
  0x3b   : > { %4727 = vst [vmem:[#allocation11_spill] sm:$0xff] %v3183_v51  ;;  %4728 = vst [vmem:[#allocation12_spill] sm:$0xff] %v3189_v53  ;;  %v442_v54 = vor.u32 %v441_v42, %v438_v39  ;;  %v479_v56 = vshll.u32 %v3162_v33, 16  ;;  %v460_v57 = vshrl.u32 %v3134_v10, 16  ;;  %v3194_v58 = vld [vmem:[%s3019_s7 + $0x50] sm:$0x1]  ;;  %v3203_v61 = vsel %vm3068_vm4, %v419_v44, %v423_v6 }
  0x3c   : > { %v3197_v59 = vld [vmem:[%s3019_s7 + $0x60] sm:$0xf]  ;;  %321 = vst.msk [vmem:[#allocation2 + $0x44] sm:$0xf] %vm303_vm3, %v3183_v51  ;;  %4730 = vst [vmem:[#allocation14_spill] sm:$0xff] %v3203_v61  ;;  %v453_v62 = vrot.slane %v452_v47, 4  ;;  %735 = vrot.lane.b32.xlu0 %v3203_v61, %s2889_s8 }
  0x3d   : > { %4729 = vst [vmem:[#allocation13_spill] sm:$0xff] %v3197_v59  ;;  %v475_v63 = vrot.slane %v473_v49, 4  ;;  %v463_v0 = vshll.u32 %v3134_v10, 16  ;;  %v3207_v5 = vld [vmem:[%s3019_s7 + $0x70] sm:$0xf]  ;;  %v443_v8 = vrot.slane %v442_v54, 4 }
  0x3e   : > { %4731 = vst [vmem:[#allocation15_spill] sm:$0xff] %v3207_v5  ;;  %320 = vst.msk [vmem:[#allocation2 + $0x40] sm:$0xf] %vm303_vm3, %v3197_v59  ;;  %v481_v9 = vrot.slane %v479_v56, 5  ;;  %v462_v13 = vrot.slane %v460_v57, 4  ;;  %v493_v6 = vshll.u32 %v3143_v16, 16  ;;  %v3220_v14 = vsel %vm3068_vm4, %v453_v62, %v457_v41 }
  0x3f   : > { %323 = vst.msk [vmem:[#allocation2 + $0x4c] sm:$0xf] %vm303_vm3, %v3207_v5  ;;  %4732 = vst [vmem:[#allocation16_spill] sm:$0xff] %v3220_v14  ;;  %v476_v15 = vor.u32 %v475_v63, %v3179_v48  ;;  %v465_v17 = vrot.slane %v463_v0, 5  ;;  %v497_v19 = vshrl.u32 %v3143_v16, 16  ;;  %v3232_v24 = vsel %vm3068_vm4, %v443_v8, %v447_v20  ;;  %741 = vrot.lane.b32.xlu1 %v3220_v14, %s2889_s8  ;;  %s2814_s5 = sshll.u32 %s2897_s29, 4  ;;  %s2815_s5 = int_to_ptr.vmem [resolvable:$false] %s2814_s5 }
  0x40   : > { %v3225_v21 = vld [vmem:[%s3019_s7 + $0x6c] sm:$0xf]  ;;  %v3228_v22 = vld [vmem:[%s3019_s7 + $0x7c] sm:$0xf]  ;;  %4734 = vst [vmem:[#allocation18_spill] sm:$0xff] %v3232_v24  ;;  %v495_v25 = vrot.slane %v493_v6, 5  ;;  %739 = vrot.lane.b32.xlu0 %v3232_v24, %s2889_s8 }
  0x41   : > { %4733 = vst [vmem:[#allocation17_spill] sm:$0xff] %v3225_v21  ;;  %v503_v26 = vshll.u32 %v3194_v58, 16  ;;  %v484_v31 = vshrl.u32 %v3155_v28, 16  ;;  %v3237_v32 = vld [vmem:[%s3019_s7 + $0x5c] sm:$0x1]  ;;  %v477_v36 = vrot.slane %v476_v15, 4  ;;  %v466_v38 = vor.u32 %v465_v17, %v462_v13 }
  0x42   : > { %322 = vst.msk [vmem:[#allocation2 + $0x48] sm:$0xf] %vm303_vm3, %v3225_v21  ;;  %325 = vst.msk [vmem:[#allocation2 + $0x54] sm:$0xf] %vm303_vm3, %v3228_v22  ;;  %v499_v41 = vrot.slane %v497_v19, 4  ;;  %v487_v20 = vshll.u32 %v3155_v28, 16 }
  0x43   : > { %v3245_v39 = vld [vmem:[%s3019_s7 + $0x78] sm:$0xf]  ;;  %v505_v42 = vrot.slane %v503_v26, 5  ;;  %v486_v44 = vrot.slane %v484_v31, 4  ;;  %v517_v47 = vshll.u32 %v3166_v37, 16  ;;  %v521_v49 = vshrl.u32 %v3166_v37, 16 }
  0x44   : > { %4735 = vst [vmem:[#allocation19_spill] sm:$0xff] %v3245_v39  ;;  %v3252_v54 = vld [vmem:[%s3019_s7 + $0x88] sm:$0xf]  ;;  %324 = vst.msk [vmem:[#allocation2 + $0x50] sm:$0xf] %vm303_vm3, %v3245_v39  ;;  %v3260_v56 = vsel %vm3068_vm4, %v477_v36, %v481_v9  ;;  %v467_v57 = vrot.slane %v466_v38, 4  ;;  %v500_v62 = vor.u32 %v499_v41, %v495_v25 }
  0x45   : > { %4736 = vst [vmem:[#allocation20_spill] sm:$0xff] %v3260_v56  ;;  %v489_v63 = vrot.slane %v487_v20, 5  ;;  %v3263_v0 = vld [vmem:[%s3019_s7 + $0x84] sm:$0xf]  ;;  %327 = vst.msk [vmem:[#allocation2 + $0x5c] sm:$0xf] %vm303_vm3, %v3252_v54  ;;  %745 = vrot.lane.b32.xlu1 %v3260_v56, %s2889_s8 }
  0x46   : > { %4737 = vst [vmem:[#allocation21_spill] sm:$0xff] %v3263_v0  ;;  %v519_v8 = vrot.slane %v517_v47, 5  ;;  %v523_v13 = vrot.slane %v521_v49, 4  ;;  %v527_v6 = vshll.u32 %v3237_v32, 16  ;;  %v508_v15 = vshrl.u32 %v3173_v43, 16 }
  0x47   : > { %v3270_v17 = vld [vmem:[%s3019_s7 + $0x94] sm:$0xf]  ;;  %326 = vst.msk [vmem:[#allocation2 + $0x58] sm:$0xf] %vm303_vm3, %v3263_v0  ;;  %v3277_v9 = vsel %vm3068_vm4, %v467_v57, %v3179_v48  ;;  %v501_v19 = vrot.slane %v500_v62, 4  ;;  %v490_v26 = vor.u32 %v489_v63, %v486_v44  ;;  %v511_v31 = vshll.u32 %v3173_v43, 16 }
  0x48   : > { %4738 = vst [vmem:[#allocation22_spill] sm:$0xff] %v3270_v17  ;;  %4739 = vst [vmem:[#allocation23_spill] sm:$0xff] %v3277_v9  ;;  %v3281_v36 = vld [vmem:[%s3019_s7 + $0x68] sm:$0x1]  ;;  %v3284_v38 = vld [vmem:[%s3019_s7 + $0x90] sm:$0xf]  ;;  %v524_v41 = vor.u32 %v523_v13, %v519_v8  ;;  %743 = vrot.lane.b32.xlu0 %v3277_v9, %s2889_s8 }
  0x49   : > { %329 = vst.msk [vmem:[#allocation2 + $0x64] sm:$0xf] %vm303_vm3, %v3270_v17  ;;  %v529_v20 = vrot.slane %v527_v6, 5  ;;  %v510_v47 = vrot.slane %v508_v15, 4  ;;  %v541_v48 = vshll.u32 %v3183_v51, 16  ;;  %v3300_v44 = vsel %vm3068_vm4, %v501_v19, %v505_v42 }
  0x4a   : > { %v3292_v49 = vld [vmem:[%s3019_s7 + $0xa0] sm:$0xf]  ;;  %328 = vst.msk [vmem:[#allocation2 + $0x60] sm:$0xf] %vm303_vm3, %v3284_v38  ;;  %4740 = vst [vmem:[#allocation24_spill] sm:$0xff] %v3300_v44  ;;  %v491_v57 = vrot.slane %v490_v26, 4  ;;  %749 = vrot.lane.b32.xlu1 %v3300_v44, %s2889_s8 }
  0x4b   : > { %v513_v62 = vrot.slane %v511_v31, 5  ;;  %v545_v63 = vshrl.u32 %v3183_v51, 16  ;;  %331 = vst.msk [vmem:[#allocation2 + $0x6c] sm:$0xf] %vm303_vm3, %v3292_v49  ;;  %v525_v13 = vrot.slane %v524_v41, 4  ;;  %v543_v6 = vrot.slane %v541_v48, 5 }
  0x4c   : > { %v551_v15 = vshll.u32 %v3281_v36, 16  ;;  %v532_v56 = vshrl.u32 %v3197_v59, 16  ;;  %v3308_v9 = vld [vmem:[%s3019_s7 + $0x9c] sm:$0xf]  ;;  %v3312_v42 = vsel %vm3068_vm4, %v491_v57, %v495_v25  ;;  %v535_v31 = vshll.u32 %v3197_v59, 16 }
  0x4d   : > { %4741 = vst [vmem:[#allocation25_spill] sm:$0xff] %v3312_v42  ;;  %v514_v19 = vor.u32 %v513_v62, %v510_v47  ;;  %v547_v26 = vrot.slane %v545_v63, 4  ;;  %v3316_v24 = vld [vmem:[%s3019_s7 + $0x74] sm:$0x1]  ;;  %v3319_v41 = vld [vmem:[%s3019_s7 + $0xac] sm:$0xf]  ;;  %v3327_v48 = vsel %vm3068_vm4, %v525_v13, %v529_v20  ;;  %747 = vrot.lane.b32.xlu0 %v3312_v42, %s2889_s8 }
  0x4e   : > { %4742 = vst [vmem:[#allocation26_spill] sm:$0xff] %v3316_v24  ;;  %330 = vst.msk [vmem:[#allocation2 + $0x68] sm:$0xf] %vm303_vm3, %v3308_v9  ;;  %v553_v25 = vrot.slane %v551_v15, 5  ;;  %v534_v47 = vrot.slane %v532_v56, 4  ;;  %v565_v57 = vshll.u32 %v3207_v5, 16  ;;  %753 = vrot.lane.b32.xlu1 %v3327_v48, %s2889_s8 }
  0x4f   : > { %4743 = vst [vmem:[#allocation27_spill] sm:$0xff] %v3327_v48  ;;  %v3331_v62 = vld [vmem:[%s3019_s7 + $0xa8] sm:$0xf]  ;;  %333 = vst.msk [vmem:[#allocation2 + $0x74] sm:$0xf] %vm303_vm3, %v3319_v41  ;;  %v515_v63 = vrot.slane %v514_v19, 4  ;;  %v548_v44 = vor.u32 %v547_v26, %v543_v6 }
  0x50   : > { %4744 = vst [vmem:[#allocation28_spill] sm:$0xff] %v3331_v62  ;;  %v537_v14 = vrot.slane %v535_v31, 5  ;;  %v569_v20 = vshrl.u32 %v3207_v5, 16  ;;  %v3339_v13 = vld [vmem:[%s3019_s7 + $0xb8] sm:$0xf]  ;;  %v567_v56 = vrot.slane %v565_v57, 5 }
  0x51   : > { %332 = vst.msk [vmem:[#allocation2 + $0x70] sm:$0xf] %vm303_vm3, %v3331_v62  ;;  %v575_v15 = vshll.u32 %v3316_v24, 16  ;;  %v556_v61 = vshrl.u32 %v3225_v21, 16  ;;  %v559_v53 = vshll.u32 %v3225_v21, 16  ;;  %v3353_v19 = vsel %vm3068_vm4, %v515_v63, %v519_v8 }
  0x52   : > { %v3347_v30 = vld [vmem:[%s3019_s7 + $0x80] sm:$0x1]  ;;  %335 = vst.msk [vmem:[#allocation2 + $0x7c] sm:$0xf] %vm303_vm3, %v3339_v13  ;;  %4745 = vst [vmem:[#allocation29_spill] sm:$0xff] %v3353_v19  ;;  %v549_v26 = vrot.slane %v548_v44, 4  ;;  %v538_v31 = vor.u32 %v537_v14, %v534_v47  ;;  %751 = vrot.lane.b32.xlu0 %v3353_v19, %s2889_s8 }
  0x53   : > { %v571_v42 = vrot.slane %v569_v20, 4  ;;  %v3356_v12 = vld [vmem:[%s3019_s7 + $0xb4] sm:$0xf]  ;;  %v577_v57 = vrot.slane %v575_v15, 5  ;;  %v558_v46 = vrot.slane %v556_v61, 4  ;;  %v561_v52 = vrot.slane %v559_v53, 5 }
  0x54   : > { %v589_v21 = vshll.u32 %v3228_v22, 16  ;;  %334 = vst.msk [vmem:[#allocation2 + $0x78] sm:$0xf] %vm303_vm3, %v3356_v12  ;;  %v3367_v14 = vsel %vm3068_vm4, %v549_v26, %v553_v25  ;;  %v539_v8 = vrot.slane %v538_v31, 4  ;;  %v593_v47 = vshrl.u32 %v3228_v22, 16 }
  0x55   : > { %4746 = vst [vmem:[#allocation30_spill] sm:$0xff] %v3367_v14  ;;  %v572_v44 = vor.u32 %v571_v42, %v567_v56  ;;  %v562_v63 = vor.u32 %v561_v52, %v558_v46  ;;  %v599_v53 = vshll.u32 %v3347_v30, 16  ;;  %v580_v20 = vshrl.u32 %v3245_v39, 16  ;;  %v3378_v25 = vld [vmem:[%s3019_s7 + $0x8c] sm:$0x1]  ;;  %757 = vrot.lane.b32.xlu1 %v3367_v14, %s2889_s8 }
  0x56   : > { %v591_v61 = vrot.slane %v589_v21, 5  ;;  %v3374_v15 = vsel %vm3068_vm4, %v539_v8, %v543_v6  ;;  %v595_v19 = vrot.slane %v593_v47, 4  ;;  %v583_v24 = vshll.u32 %v3245_v39, 16  ;;  %4748 = vst [vmem:[#allocation32_spill] sm:$0xff] %v3378_v25 }
  0x57   : > { %4747 = vst [vmem:[#allocation31_spill] sm:$0xff] %v3374_v15  ;;  %v573_v48 = vrot.slane %v572_v44, 4  ;;  %v563_v42 = vrot.slane %v562_v63, 4  ;;  %v601_v46 = vrot.slane %v599_v53, 5  ;;  %v582_v52 = vrot.slane %v580_v20, 4  ;;  %755 = vrot.lane.b32.xlu0 %v3374_v15, %s2889_s8 }
  0x58   : > { %v613_v21 = vshll.u32 %v3252_v54, 16  ;;  %v596_v26 = vor.u32 %v595_v19, %v591_v61  ;;  %v585_v31 = vrot.slane %v583_v24, 5  ;;  %v617_v8 = vshrl.u32 %v3252_v54, 16 }
  0x59   : > { %v3387_v6 = vsel %vm3068_vm4, %v573_v48, %v577_v57  ;;  %v3392_v44 = vsel %vm3068_vm4, %v563_v42, %v567_v56  ;;  %v623_v63 = vshll.u32 %v3378_v25, 16  ;;  %v604_v53 = vshrl.u32 %v3263_v0, 16  ;;  %v3398_v48 = vld [vmem:[%s3019_s7 + $0x98] sm:$0x1]  ;;  %v3418_v25 = vld [vmem:[%s3019_s7 + $0xa4] sm:$0x1] }
  0x5a   : > { %4749 = vst [vmem:[#allocation33_spill] sm:$0xff] %v3387_v6  ;;  %4750 = vst [vmem:[#allocation34_spill] sm:$0xff] %v3392_v44  ;;  %v615_v47 = vrot.slane %v613_v21, 5  ;;  %v597_v20 = vrot.slane %v596_v26, 4  ;;  %v586_v14 = vor.u32 %v585_v31, %v582_v52  ;;  %v619_v15 = vrot.slane %v617_v8, 4  ;;  %761 = vrot.lane.b32.xlu1 %v3387_v6, %s2889_s8 }
  0x5b   : > { %v607_v39 = vshll.u32 %v3263_v0, 16  ;;  %v625_v24 = vrot.slane %v623_v63, 5  ;;  %v606_v19 = vrot.slane %v604_v53, 4  ;;  %v637_v56 = vshll.u32 %v3270_v17, 16  ;;  %759 = vrot.lane.b32.xlu0 %v3392_v44, %s2889_s8 }
  0x5c   : > { %v641_v57 = vshrl.u32 %v3270_v17, 16  ;;  %v3408_v42 = vsel %vm3068_vm4, %v597_v20, %v601_v46  ;;  %v587_v52 = vrot.slane %v586_v14, 4  ;;  %v620_v21 = vor.u32 %v619_v15, %v615_v47 }
  0x5d   : > { %4751 = vst [vmem:[#allocation35_spill] sm:$0xff] %v3408_v42  ;;  %v609_v26 = vrot.slane %v607_v39, 5  ;;  %v639_v31 = vrot.slane %v637_v56, 5  ;;  %v647_v63 = vshll.u32 %v3398_v48, 16  ;;  %v628_v53 = vshrl.u32 %v3284_v38, 16 }
  0x5e   : > { %v643_v8 = vrot.slane %v641_v57, 4  ;;  %v3414_v6 = vsel %vm3068_vm4, %v587_v52, %v591_v61  ;;  %v621_v0 = vrot.slane %v620_v21, 4  ;;  %v631_v44 = vshll.u32 %v3284_v38, 16  ;;  %765 = vrot.lane.b32.xlu1 %v3408_v42, %s2889_s8 }
  0x5f   : > { %4752 = vst [vmem:[#allocation36_spill] sm:$0xff] %v3414_v6  ;;  %v610_v17 = vor.u32 %v609_v26, %v606_v19  ;;  %v649_v14 = vrot.slane %v647_v63, 5  ;;  %v630_v15 = vrot.slane %v628_v53, 4  ;;  %v661_v46 = vshll.u32 %v3292_v49, 16  ;;  %763 = vrot.lane.b32.xlu0 %v3414_v6, %s2889_s8 }
  0x60   : > { %v644_v39 = vor.u32 %v643_v8, %v639_v31  ;;  %v3427_v61 = vsel %vm3068_vm4, %v621_v0, %v625_v24  ;;  %v633_v19 = vrot.slane %v631_v44, 5  ;;  %v665_v56 = vshrl.u32 %v3292_v49, 16 }
  0x61   : > { %4753 = vst [vmem:[#allocation37_spill] sm:$0xff] %v3427_v61  ;;  %v611_v20 = vrot.slane %v610_v17, 4  ;;  %v663_v52 = vrot.slane %v661_v46, 5  ;;  %v671_v21 = vshll.u32 %v3418_v25, 16  ;;  %v652_v26 = vshrl.u32 %v3308_v9, 16 }
  0x62   : > { %v645_v57 = vrot.slane %v644_v39, 4  ;;  %v634_v63 = vor.u32 %v633_v19, %v630_v15  ;;  %v667_v53 = vrot.slane %v665_v56, 4  ;;  %v655_v0 = vshll.u32 %v3308_v9, 16  ;;  %v3438_v17 = vld [vmem:[%s3019_s7 + $0xb0] sm:$0x1]  ;;  %769 = vrot.lane.b32.xlu1 %v3427_v61, %s2889_s8 }
  0x63   : > { %v3434_v8 = vsel %vm3068_vm4, %v611_v20, %v615_v47  ;;  %v673_v24 = vrot.slane %v671_v21, 5  ;;  %v654_v39 = vrot.slane %v652_v26, 4  ;;  %v685_v46 = vshll.u32 %v3319_v41, 16 }
  0x64   : > { %4754 = vst [vmem:[#allocation38_spill] sm:$0xff] %v3434_v8  ;;  %v3444_v44 = vsel %vm3068_vm4, %v645_v57, %v649_v14  ;;  %767 = vrot.lane.b32.xlu0 %v3434_v8, %s2889_s8  ;;  %v635_v47 = vrot.slane %v634_v63, 4  ;;  %v668_v15 = vor.u32 %v667_v53, %v663_v52  ;;  %v657_v20 = vrot.slane %v655_v0, 5  ;;  %v3458_v8 = vld [vmem:[%s3019_s7 + $0xbc] sm:$0x1] }
  0x65   : > { %4755 = vst [vmem:[#allocation39_spill] sm:$0xff] %v3444_v44  ;;  %v689_v19 = vshrl.u32 %v3319_v41, 16  ;;  %v687_v56 = vrot.slane %v685_v46, 5  ;;  %v695_v61 = vshll.u32 %v3438_v17, 16  ;;  %v676_v42 = vshrl.u32 %v3331_v62, 16 }
  0x66   : > { %v679_v14 = vshll.u32 %v3331_v62, 16  ;;  %v3455_v57 = vsel %vm3068_vm4, %v635_v47, %v639_v31  ;;  %v669_v21 = vrot.slane %v668_v15, 4  ;;  %v658_v26 = vor.u32 %v657_v20, %v654_v39  ;;  %773 = vrot.lane.b32.xlu1 %v3444_v44, %s2889_s8 }
  0x67   : > { %4756 = vst [vmem:[#allocation40_spill] sm:$0xff] %v3455_v57  ;;  %v691_v6 = vrot.slane %v689_v19, 4  ;;  %v697_v63 = vrot.slane %v695_v61, 5  ;;  %v678_v53 = vrot.slane %v676_v42, 4  ;;  %v709_v46 = vshll.u32 %v3339_v13, 16 }
  0x68   : > { %v681_v0 = vrot.slane %v679_v14, 5  ;;  %771 = vrot.lane.b32.xlu0 %v3455_v57, %s2889_s8  ;;  %v3467_v31 = vsel %vm3068_vm4, %v669_v21, %v673_v24  ;;  %v659_v47 = vrot.slane %v658_v26, 4  ;;  %v713_v15 = vshrl.u32 %v3339_v13, 16 }
  0x69   : > { %v692_v39 = vor.u32 %v691_v6, %v687_v56  ;;  %v711_v19 = vrot.slane %v709_v46, 5  ;;  %v719_v44 = vshll.u32 %v3458_v8, 16  ;;  %v700_v42 = vshrl.u32 %v3356_v12, 16 }
  0x6a   : > { %v682_v20 = vor.u32 %v681_v0, %v678_v53  ;;  %v3474_v61 = vsel %vm3068_vm4, %v659_v47, %v663_v52  ;;  %v715_v57 = vrot.slane %v713_v15, 4  ;;  %v703_v62 = vshll.u32 %v3356_v12, 16  ;;  %777 = vrot.lane.b32.xlu1 %v3467_v31, %s2889_s8 }
  0x6b   : > { %v693_v14 = vrot.slane %v692_v39, 4  ;;  %v721_v24 = vrot.slane %v719_v44, 5  ;;  %v702_v21 = vrot.slane %v700_v42, 4  ;;  %v4758_v0 = vmov 0 }
  0x6c   : > { %v683_v6 = vrot.slane %v682_v20, 4  ;;  %775 = vrot.lane.b32.xlu0 %v3474_v61, %s2889_s8  ;;  %v716_v53 = vor.u32 %v715_v57, %v711_v19  ;;  %v705_v52 = vrot.slane %v703_v62, 5  ;;  %v4759_v0 = vsel %vm3487_vm7, 4294967295, %v4758_v0 }
  0x6d   : > { %v3483_v26 = vsel %vm3068_vm4, %v693_v14, %v697_v63  ;;  %4760 = vst [vmem:[#allocation42_spill] sm:$0xff] %v4759_v0  ;;  %v905_v46 = vrot.slane %v3034_v7, 5  ;;  %v2580_v47 = vrot.slane %v3028_v3, 9  ;;  %v908_v62 = vrot.slane %v3053_v18, 5 }
  0x6e   : > { %4757 = vst [vmem:[#allocation41_spill] sm:$0xff] %v3483_v26  ;;  %v3494_v44 = vsel %vm3068_vm4, %v683_v6, %v687_v56  ;;  %v717_v39 = vrot.slane %v716_v53, 4  ;;  %v706_v15 = vor.u32 %v705_v52, %v702_v21  ;;  %781 = vrot.lane.b32.xlu1 %v3483_v26, %s2889_s8  ;;  %v912_v3 = vrot.slane %v3025_v2, 5  ;;  %v4778_v26 = vld [vmem:[#allocation28_spill] sm:$0xff] }
  0x6f   : > { %4761 = vst [vmem:[#allocation43_spill] sm:$0xff] %v3494_v44  ;;  %v906_v57 = vsel %vm3487_vm7, %v2580_v47, %v905_v46  ;;  %v907_v63 = vrot.slane %v905_v46, 4  ;;  %v915_v14 = vrot.slane %v3046_v11, 5  ;;  %v919_v6 = vrot.slane %v3057_v23, 5 }
  0x70   : > { %779 = vrot.lane.b32.xlu0 %v3494_v44, %s2889_s8  ;;  %v3506_v7 = vsel %vm3068_vm4, %v717_v39, %v721_v24  ;;  %v707_v56 = vrot.slane %v706_v15, 4  ;;  %v914_v42 = vrot.slane %v912_v3, 4  ;;  %v2581_v24 = vrot.slane %v3022_v1, 9 }
  0x71   : > { %4762 = vst [vmem:[#allocation44_spill] sm:$0xff] %v3506_v7  ;;  %v909_v18 = vsel %vm3487_vm7, %v907_v63, %v908_v62  ;;  %v921_v21 = vrot.slane %v919_v6, 4  ;;  %v922_v53 = vrot.slane %v3061_v27, 5  ;;  %v926_v52 = vrot.slane %v3077_v35, 5 }
  0x72   : > { %v3511_v20 = vsel %vm3068_vm4, %v707_v56, %v711_v19  ;;  %785 = vrot.lane.b32.xlu1 %v3506_v7, %s2889_s8  ;;  %v3526_v19 = vsel %vm3487_vm7, %v914_v42, %v915_v14  ;;  %v3532_v11 = vsel %vm3487_vm7, %v2581_v24, %v912_v3  ;;  %v2582_v46 = vrot.slane %v3074_v34, 9 }
  0x73   : > { %4763 = vst [vmem:[#allocation45_spill] sm:$0xff] %v3511_v20  ;;  %v3541_v47 = vsel %vm3487_vm7, %v921_v21, %v922_v53  ;;  %v928_v39 = vrot.slane %v926_v52, 4  ;;  %v929_v27 = vrot.slane %v3080_v40, 5  ;;  %v933_v15 = vrot.slane %v3097_v50, 5 }
  0x74   : > { %783 = vrot.lane.b32.xlu0 %v3511_v20, %s2889_s8  ;;  %v3547_v62 = vsel %vm3487_vm7, %v2582_v46, %v919_v6  ;;  %v936_v40 = vrot.slane %v3127_v4, 5  ;;  %v940_v3 = vrot.slane %v3119_v60, 5  ;;  %v2584_v42 = vrot.slane %v3110_v55, 9 }
  0x75   : > { %v3556_v56 = vsel %vm3487_vm7, %v928_v39, %v929_v27  ;;  %v935_v63 = vrot.slane %v933_v15, 4  ;;  %v943_v4 = vrot.slane %v3162_v33, 5  ;;  %v947_v24 = vrot.slane %v3143_v16, 5 }
  0x76   : > { %1017 = vrot.lane.b32.xlu1 %v909_v18, %s2890_s9  ;;  %v942_v6 = vrot.slane %v940_v3, 4  ;;  %v3577_v21 = vsel %vm3487_vm7, %v2584_v42, %v933_v15  ;;  %v2585_v53 = vrot.slane %v3134_v10, 9  ;;  %v950_v33 = vrot.slane %v3194_v58, 5 }
  0x77   : > { %v3571_v14 = vsel %vm3487_vm7, %v935_v63, %v936_v40  ;;  %v949_v46 = vrot.slane %v947_v24, 4  ;;  %v954_v39 = vrot.slane %v3166_v37, 5  ;;  %v2586_v15 = vrot.slane %v3155_v28, 9 }
  0x78   : > { %1015 = vrot.lane.b32.xlu0 %v906_v57, %s2890_s9  ;;  %v2583_v57 = vrot.slane %v3088_v45, 9  ;;  %v3592_v27 = vsel %vm3487_vm7, %v2585_v53, %v940_v3  ;;  %v957_v58 = vrot.slane %v3237_v32, 5  ;;  %v961_v40 = vrot.slane %v3183_v51, 5 }
  0x79   : > { %4765 = vst [vmem:[#allocation47_spill] sm:$0xff] %v3592_v27  ;;  %v956_v63 = vrot.slane %v954_v39, 4  ;;  %v3607_v3 = vsel %vm3487_vm7, %v2586_v15, %v947_v24  ;;  %v2587_v42 = vrot.slane %v3173_v43, 9  ;;  %v964_v32 = vrot.slane %v3281_v36, 5  ;;  %v4771_v36 = vld [vmem:[#allocation26_spill] sm:$0xff] }
  0x7a   : > { %1021 = vrot.lane.b32.xlu1 %v3526_v19, %s2890_s9  ;;  %v3562_v18 = vsel %vm3487_vm7, %v2583_v57, %v926_v52  ;;  %v3586_v52 = vsel %vm3487_vm7, %v942_v6, %v943_v4  ;;  %v3601_v57 = vsel %vm3487_vm7, %v949_v46, %v950_v33  ;;  %4767 = vst [vmem:[#allocation49_spill] sm:$0xff] %v3607_v3  ;;  %v963_v4 = vrot.slane %v961_v40, 4 }
  0x7b   : > { %4764 = vst [vmem:[#allocation46_spill] sm:$0xff] %v3586_v52  ;;  %4766 = vst [vmem:[#allocation48_spill] sm:$0xff] %v3601_v57  ;;  %v3616_v6 = vsel %vm3487_vm7, %v956_v63, %v957_v58  ;;  %v968_v53 = vrot.slane %v3207_v5, 5  ;;  %v3622_v24 = vsel %vm3487_vm7, %v2587_v42, %v954_v39  ;;  %v2588_v46 = vrot.slane %v3197_v59, 9  ;;  %v4773_v42 = vld [vmem:[#allocation17_spill] sm:$0xff] }
  0x7c   : > { %1019 = vrot.lane.b32.xlu0 %v3532_v11, %s2890_s9  ;;  %4768 = vst [vmem:[#allocation50_spill] sm:$0xff] %v3616_v6  ;;  %4769 = vst [vmem:[#allocation51_spill] sm:$0xff] %v3622_v24  ;;  %v3631_v33 = vsel %vm3487_vm7, %v963_v4, %v964_v32  ;;  %v971_v63 = vrot.slane %v4771_v36, 5  ;;  %v975_v58 = vrot.slane %v3228_v22, 5  ;;  %v2589_v29 = vrot.slane %v4773_v42, 9 }
  0x7d   : > { %4770 = vst [vmem:[#allocation52_spill] sm:$0xff] %v3631_v33  ;;  %v970_v15 = vrot.slane %v968_v53, 4  ;;  %v3637_v39 = vsel %vm3487_vm7, %v2588_v46, %v961_v40  ;;  %v978_v36 = vrot.slane %v3347_v30, 5  ;;  %v4774_v46 = vld [vmem:[#allocation19_spill] sm:$0xff]  ;;  %v4775_v30 = vld [vmem:[#allocation32_spill] sm:$0xff]  ;;  %v1010_v44 = vrot.slane %v3339_v13, 5 }
  0x7e   : > { %1025 = vrot.lane.b32.xlu1 %v3541_v47, %s2890_s9  ;;  %4772 = vst [vmem:[#allocation26_spill] sm:$0xff] %v3637_v39  ;;  %v977_v32 = vrot.slane %v975_v58, 4  ;;  %v3652_v40 = vsel %vm3487_vm7, %v2589_v29, %v968_v53  ;;  %v4777_v53 = vld [vmem:[#allocation21_spill] sm:$0xff]  ;;  %vm1395_vm11 = vcmask 158848   ;;  %vm1532_vm12 = vcmask 191648  }
  0x7f   : > { %v3646_v4 = vsel %vm3487_vm7, %v970_v15, %v971_v63  ;;  %v2591_v7 = vrot.slane %v4777_v53, 9  ;;  %vm1663_vm13 = vcmask 224448   ;;  %vm1816_vm14 = vcmask 257248  }
  0x80   : > { %1023 = vrot.lane.b32.xlu0 %v3547_v62, %s2890_s9  ;;  %v3661_v15 = vsel %vm3487_vm7, %v977_v32, %v978_v36  ;;  %vm1953_vm15 = vcmask 290048  }
  0x82   : > { %1029 = vrot.lane.b32.xlu1 %v3556_v56, %s2890_s9 }
  0x84   : > { %1027 = vrot.lane.b32.xlu0 %v3562_v18, %s2890_s9 }
  0x86   : > { %1033 = vrot.lane.b32.xlu1 %v3571_v14, %s2890_s9 }
  0x88   : > { %1031 = vrot.lane.b32.xlu0 %v3577_v21, %s2890_s9 }
  0x8a   : > { %1037 = vrot.lane.b32.xlu1 %v3586_v52, %s2890_s9  ;;  %v2594_v52 = vrot.slane %v4778_v26, 9 }
  0x8c   : > { %1035 = vrot.lane.b32.xlu0 %v3592_v27, %s2890_s9 }
  0x8e   : > { %1041 = vrot.lane.b32.xlu1 %v3601_v57, %s2890_s9  ;;  %v1003_v57 = vrot.slane %v3319_v41, 5 }
  0x90   : > { %1039 = vrot.lane.b32.xlu0 %v3607_v3, %s2890_s9  ;;  %v996_v3 = vrot.slane %v3292_v49, 5 }
  0x92   : > { %1045 = vrot.lane.b32.xlu1 %v3616_v6, %s2890_s9  ;;  %v2590_v6 = vrot.slane %v4774_v46, 9 }
  0x94   : > { %1043 = vrot.lane.b32.xlu0 %v3622_v24, %s2890_s9  ;;  %v982_v24 = vrot.slane %v3252_v54, 5  ;;  %v3667_v29 = vsel %vm3487_vm7, %v2590_v6, %v975_v58  ;;  %v2592_v58 = vrot.slane %v3284_v38, 9 }
  0x96   : > { %1049 = vrot.lane.b32.xlu1 %v3631_v33, %s2890_s9  ;;  %v984_v63 = vrot.slane %v982_v24, 4  ;;  %v4776_v33 = vld [vmem:[#allocation22_spill] sm:$0xff]  ;;  %v3682_v6 = vsel %vm3487_vm7, %v2591_v7, %v982_v24  ;;  %v2593_v24 = vrot.slane %v3308_v9, 9 }
  0x97   : > { %v989_v20 = vrot.slane %v4776_v33, 5 }
  0x98   : > { %1047 = vrot.lane.b32.xlu0 %v3637_v39, %s2890_s9  ;;  %v985_v39 = vrot.slane %v4775_v30, 5  ;;  %v992_v30 = vrot.slane %v3398_v48, 5  ;;  %v999_v48 = vrot.slane %v3418_v25, 5  ;;  %v1005_v25 = vrot.slane %v1003_v57, 4 }
  0x99   : > { %v991_v36 = vrot.slane %v989_v20, 4  ;;  %v3697_v7 = vsel %vm3487_vm7, %v2592_v58, %v989_v20  ;;  %v3712_v58 = vsel %vm3487_vm7, %v2593_v24, %v996_v3  ;;  %v3728_v24 = vsel %vm3487_vm7, %v2594_v52, %v1003_v57 }
  0x9a   : > { %1053 = vrot.lane.b32.xlu1 %v3646_v4, %s2890_s9  ;;  %v3676_v32 = vsel %vm3487_vm7, %v984_v63, %v985_v39  ;;  %v998_v63 = vrot.slane %v996_v3, 4  ;;  %v1013_v3 = vrot.slane %v3458_v8, 5 }
  0x9b   : > { %v3691_v39 = vsel %vm3487_vm7, %v991_v36, %v992_v30  ;;  %v1006_v30 = vrot.slane %v3438_v17, 5 }
  0x9c   : > { %1051 = vrot.lane.b32.xlu0 %v3652_v40, %s2890_s9  ;;  %v3706_v36 = vsel %vm3487_vm7, %v998_v63, %v999_v48  ;;  %v1012_v63 = vrot.slane %v1010_v44, 4 }
  0x9d   : > { %v3723_v17 = vsel %vm3487_vm7, %v1005_v25, %v1006_v30 }
  0x9e   : > { %1057 = vrot.lane.b32.xlu1 %v3661_v15, %s2890_s9  ;;  %v3739_v8 = vsel %vm3487_vm7, %v1012_v63, %v1013_v3 }
  0xa0   : > { %1055 = vrot.lane.b32.xlu0 %v3667_v29, %s2890_s9  ;;  %v728_v20 = vpop.permute.xlu1 %727 }
  0xa1   : > { %822 = vst.msk [vmem:[#allocation2 + $0x8] sm:$0xf] %vm819_vm8, %v728_v20  ;;  %v724_v27 = vpop.permute.xlu0 %723 }
  0xa2   : > { %1061 = vrot.lane.b32.xlu1 %v3676_v32, %s2890_s9  ;;  %820 = vst.msk [vmem:[#allocation2] sm:$0xf] %vm819_vm8, %v724_v27  ;;  %v2595_v27 = vrot.slane %v3356_v12, 9 }
  0xa4   : > { %1059 = vrot.lane.b32.xlu0 %v3682_v6, %s2890_s9  ;;  %v730_v48 = vpop.permute.xlu1 %729  ;;  %v3743_v52 = vsel %vm3487_vm7, %v2595_v27, %v1010_v44 }
  0xa5   : > { %823 = vst.msk [vmem:[#allocation2 + $0xc] sm:$0xf] %vm819_vm8, %v730_v48  ;;  %v726_v20 = vpop.permute.xlu0 %725 }
  0xa6   : > { %1065 = vrot.lane.b32.xlu1 %v3691_v39, %s2890_s9  ;;  %821 = vst.msk [vmem:[#allocation2 + $0x4] sm:$0xf] %vm819_vm8, %v726_v20 }
  0xa8   : > { %1063 = vrot.lane.b32.xlu0 %v3697_v7, %s2890_s9  ;;  %v734_v25 = vpop.permute.xlu1 %733 }
  0xa9   : > { %825 = vst.msk [vmem:[#allocation2 + $0x14] sm:$0xf] %vm819_vm8, %v734_v25  ;;  %v732_v57 = vpop.permute.xlu0 %731 }
  0xaa   : > { %1069 = vrot.lane.b32.xlu1 %v3706_v36, %s2890_s9  ;;  %824 = vst.msk [vmem:[#allocation2 + $0x10] sm:$0xf] %vm819_vm8, %v732_v57 }
  0xac   : > { %1067 = vrot.lane.b32.xlu0 %v3712_v58, %s2890_s9  ;;  %v738_v30 = vpop.permute.xlu1 %737 }
  0xad   : > { %827 = vst.msk [vmem:[#allocation2 + $0x1c] sm:$0xf] %vm819_vm8, %v738_v30 }
  0xae   : > { %1073 = vrot.lane.b32.xlu1 %v3723_v17, %s2890_s9  ;;  %v736_v63 = vpop.permute.xlu0 %735 }
  0xaf   : > { %826 = vst.msk [vmem:[#allocation2 + $0x18] sm:$0xf] %vm819_vm8, %v736_v63 }
  0xb0   : > { %1071 = vrot.lane.b32.xlu0 %v3728_v24, %s2890_s9 }
  0xb1   : > { %v742_v44 = vpop.permute.xlu1 %741 }
  0xb2   : > { %1077 = vrot.lane.b32.xlu1 %v3739_v8, %s2890_s9  ;;  %829 = vst.msk [vmem:[#allocation2 + $0x24] sm:$0xf] %vm819_vm8, %v742_v44  ;;  %v740_v3 = vpop.permute.xlu0 %739 }
  0xb3   : > { %828 = vst.msk [vmem:[#allocation2 + $0x20] sm:$0xf] %vm819_vm8, %v740_v3 }
  0xb4   : > { %1075 = vrot.lane.b32.xlu0 %v3743_v52, %s2890_s9 }
  0xb6   : > { %1148 = vrot.lane.b32.xlu1 %v3025_v2, %s2891_s10 }
  0xb7   : > { %v746_v48 = vpop.permute.xlu1 %745 }
  0xb8   : > { %1146 = vrot.lane.b32.xlu0 %v3022_v1, %s2891_s10  ;;  %831 = vst.msk [vmem:[#allocation2 + $0x2c] sm:$0xf] %vm819_vm8, %v746_v48 }
  0xba   : > { %1152 = vrot.lane.b32.xlu1 %v3057_v23, %s2891_s10  ;;  %v744_v27 = vpop.permute.xlu0 %743 }
  0xbb   : > { %830 = vst.msk [vmem:[#allocation2 + $0x28] sm:$0xf] %vm819_vm8, %v744_v27 }
  0xbc   : > { %1150 = vrot.lane.b32.xlu0 %v3074_v34, %s2891_s10  ;;  %v750_v1 = vpop.permute.xlu1 %749 }
  0xbd   : > { %833 = vst.msk [vmem:[#allocation2 + $0x34] sm:$0xf] %vm819_vm8, %v750_v1 }
  0xbe   : > { %1156 = vrot.lane.b32.xlu1 %v3077_v35, %s2891_s10 }
  0xbf   : > { %v748_v2 = vpop.permute.xlu0 %747 }
  0xc0   : > { %1154 = vrot.lane.b32.xlu0 %v3088_v45, %s2891_s10  ;;  %832 = vst.msk [vmem:[#allocation2 + $0x30] sm:$0xf] %vm819_vm8, %v748_v2  ;;  %v754_v20 = vpop.permute.xlu1 %753 }
  0xc1   : > { %835 = vst.msk [vmem:[#allocation2 + $0x3c] sm:$0xf] %vm819_vm8, %v754_v20 }
  0xc2   : > { %1160 = vrot.lane.b32.xlu1 %v3097_v50, %s2891_s10 }
  0xc4   : > { %1158 = vrot.lane.b32.xlu0 %v3110_v55, %s2891_s10  ;;  %v752_v25 = vpop.permute.xlu0 %751 }
  0xc5   : > { %834 = vst.msk [vmem:[#allocation2 + $0x38] sm:$0xf] %vm819_vm8, %v752_v25 }
  0xc6   : > { %1164 = vrot.lane.b32.xlu1 %v3119_v60, %s2891_s10 }
  0xc7   : > { %v758_v57 = vpop.permute.xlu1 %757 }
  0xc8   : > { %1162 = vrot.lane.b32.xlu0 %v3134_v10, %s2891_s10  ;;  %837 = vst.msk [vmem:[#allocation2 + $0x44] sm:$0xf] %vm819_vm8, %v758_v57 }
  0xc9   : > { %v756_v30 = vpop.permute.xlu0 %755 }
  0xca   : > { %836 = vst.msk [vmem:[#allocation2 + $0x40] sm:$0xf] %vm819_vm8, %v756_v30  ;;  %1168 = vrot.lane.b32.xlu1 %v3143_v16, %s2891_s10 }
  0xcc   : > { %1166 = vrot.lane.b32.xlu0 %v3155_v28, %s2891_s10  ;;  %v762_v63 = vpop.permute.xlu1 %761 }
  0xcd   : > { %839 = vst.msk [vmem:[#allocation2 + $0x4c] sm:$0xf] %vm819_vm8, %v762_v63  ;;  %v760_v44 = vpop.permute.xlu0 %759 }
  0xce   : > { %838 = vst.msk [vmem:[#allocation2 + $0x48] sm:$0xf] %vm819_vm8, %v760_v44  ;;  %1172 = vrot.lane.b32.xlu1 %v3166_v37, %s2891_s10 }
  0xd0   : > { %1170 = vrot.lane.b32.xlu0 %v3173_v43, %s2891_s10  ;;  %v766_v3 = vpop.permute.xlu1 %765 }
  0xd1   : > { %841 = vst.msk [vmem:[#allocation2 + $0x54] sm:$0xf] %vm819_vm8, %v766_v3  ;;  %v764_v48 = vpop.permute.xlu0 %763 }
  0xd2   : > { %840 = vst.msk [vmem:[#allocation2 + $0x50] sm:$0xf] %vm819_vm8, %v764_v48  ;;  %1176 = vrot.lane.b32.xlu1 %v3183_v51, %s2891_s10  ;;  %v4789_v51 = vld [vmem:[#allocation36_spill] sm:$0xff] }
  0xd4   : > { %1174 = vrot.lane.b32.xlu0 %v3197_v59, %s2891_s10  ;;  %v770_v27 = vpop.permute.xlu1 %769 }
  0xd5   : > { %843 = vst.msk [vmem:[#allocation2 + $0x5c] sm:$0xf] %vm819_vm8, %v770_v27 }
  0xd6   : > { %v768_v1 = vpop.permute.xlu0 %767  ;;  %1180 = vrot.lane.b32.xlu1 %v3207_v5, %s2891_s10  ;;  %v4787_v5 = vld [vmem:[#allocation34_spill] sm:$0xff] }
  0xd7   : > { %842 = vst.msk [vmem:[#allocation2 + $0x58] sm:$0xf] %vm819_vm8, %v768_v1 }
  0xd8   : > { %1178 = vrot.lane.b32.xlu0 %v4773_v42, %s2891_s10  ;;  %v774_v2 = vpop.permute.xlu1 %773 }
  0xd9   : > { %845 = vst.msk [vmem:[#allocation2 + $0x64] sm:$0xf] %vm819_vm8, %v774_v2 }
  0xda   : > { %v772_v20 = vpop.permute.xlu0 %771  ;;  %1184 = vrot.lane.b32.xlu1 %v3228_v22, %s2891_s10 }
  0xdb   : > { %844 = vst.msk [vmem:[#allocation2 + $0x60] sm:$0xf] %vm819_vm8, %v772_v20  ;;  %v3842_v20 = vld [vmem:[%s3019_s7 + $0xc4] sm:$0xf] }
  0xdc   : > { %1182 = vrot.lane.b32.xlu0 %v4774_v46, %s2891_s10  ;;  %v778_v25 = vpop.permute.xlu1 %777 }
  0xdd   : > { %847 = vst.msk [vmem:[#allocation2 + $0x6c] sm:$0xf] %vm819_vm8, %v778_v25 }
  0xde   : > { %v776_v57 = vpop.permute.xlu0 %775  ;;  %1188 = vrot.lane.b32.xlu1 %v3252_v54, %s2891_s10 }
  0xdf   : > { %846 = vst.msk [vmem:[#allocation2 + $0x68] sm:$0xf] %vm819_vm8, %v776_v57  ;;  %v3845_v57 = vld [vmem:[%s3019_s7 + $0xc0] sm:$0xf] }
  0xe0   : > { %1186 = vrot.lane.b32.xlu0 %v4777_v53, %s2891_s10  ;;  %v782_v30 = vpop.permute.xlu1 %781 }
  0xe1   : > { %849 = vst.msk [vmem:[#allocation2 + $0x74] sm:$0xf] %vm819_vm8, %v782_v30 }
  0xe2   : > { %v780_v63 = vpop.permute.xlu0 %779  ;;  %1192 = vrot.lane.b32.xlu1 %v4776_v33, %s2891_s10 }
  0xe3   : > { %848 = vst.msk [vmem:[#allocation2 + $0x70] sm:$0xf] %vm819_vm8, %v780_v63 }
  0xe4   : > { %1190 = vrot.lane.b32.xlu0 %v3284_v38, %s2891_s10  ;;  %v786_v44 = vpop.permute.xlu1 %785 }
  0xe5   : > { %851 = vst.msk [vmem:[#allocation2 + $0x7c] sm:$0xf] %vm819_vm8, %v786_v44 }
  0xe6   : > { %v784_v3 = vpop.permute.xlu0 %783  ;;  %1196 = vrot.lane.b32.xlu1 %v3292_v49, %s2891_s10 }
  0xe7   : > { %850 = vst.msk [vmem:[#allocation2 + $0x78] sm:$0xf] %vm819_vm8, %v784_v3  ;;  %v4779_v3 = vld [vmem:[#allocation8_spill] sm:$0xff] }
  0xe8   : > { %1194 = vrot.lane.b32.xlu0 %v3308_v9, %s2891_s10  ;;  %v1018_v48 = vpop.permute.xlu1 %1017 }
  0xe9   : > { %1113 = vst.msk [vmem:[#allocation2 + $0x4] sm:$0xf] %vm1111_vm9, %v1018_v48  ;;  %v4780_v48 = vld [vmem:[#allocation7_spill] sm:$0xff] }
  0xea   : > { %v1016_v27 = vpop.permute.xlu0 %1015  ;;  %1200 = vrot.lane.b32.xlu1 %v3319_v41, %s2891_s10 }
  0xeb   : > { %1112 = vst.msk [vmem:[#allocation2] sm:$0xf] %vm1111_vm9, %v1016_v27 }
  0xec   : > { %1198 = vrot.lane.b32.xlu0 %v4778_v26, %s2891_s10  ;;  %v1022_v1 = vpop.permute.xlu1 %1021 }
  0xed   : > { %1115 = vst.msk [vmem:[#allocation2 + $0xc] sm:$0xf] %vm1111_vm9, %v1022_v1 }
  0xee   : > { %v1020_v2 = vpop.permute.xlu0 %1019  ;;  %1204 = vrot.lane.b32.xlu1 %v3339_v13, %s2891_s10 }
  0xef   : > { %1114 = vst.msk [vmem:[#allocation2 + $0x8] sm:$0xf] %vm1111_vm9, %v1020_v2  ;;  %v4781_v2 = vld [vmem:[#allocation9_spill] sm:$0xff] }
  0xf0   : > { %1202 = vrot.lane.b32.xlu0 %v3356_v12, %s2891_s10  ;;  %v1026_v25 = vpop.permute.xlu1 %1025 }
  0xf1   : > { %1117 = vst.msk [vmem:[#allocation2 + $0x14] sm:$0xf] %vm1111_vm9, %v1026_v25  ;;  %v4782_v25 = vld [vmem:[#allocation10_spill] sm:$0xff] }
  0xf2   : > { %v1024_v30 = vpop.permute.xlu0 %1023  ;;  %1208 = vrot.lane.b32.xlu1 %v3842_v20, %s2891_s10 }
  0xf3   : > { %1116 = vst.msk [vmem:[#allocation2 + $0x10] sm:$0xf] %vm1111_vm9, %v1024_v30 }
  0xf4   : > { %1206 = vrot.lane.b32.xlu0 %v3845_v57, %s2891_s10  ;;  %v1030_v63 = vpop.permute.xlu1 %1029  ;;  %s2629_s10 = sshll.u32 %s2878_s18, 12 }
  0xf5   : > { %1119 = vst.msk [vmem:[#allocation2 + $0x1c] sm:$0xf] %vm1111_vm9, %v1030_v63  ;;  %s4569_s24 = scalar_lea.hbm %s4627_s4, %s2629_s10 }
  0xf6   : > { %v1028_v44 = vpop.permute.xlu0 %1027  ;;  %1301 = vrot.lane.b32.xlu1 %v4779_v3, %s2892_s11  ;;  %v4784_v3 = vld [vmem:[#allocation14_spill] sm:$0xff] }
  0xf7   : > { %1118 = vst.msk [vmem:[#allocation2 + $0x18] sm:$0xf] %vm1111_vm9, %v1028_v44  ;;  %v4783_v44 = vld [vmem:[#allocation12_spill] sm:$0xff] }
  0xf8   : > { %1299 = vrot.lane.b32.xlu0 %v4780_v48, %s2892_s11  ;;  %v1034_v27 = vpop.permute.xlu1 %1033 }
  0xf9   : > { %1121 = vst.msk [vmem:[#allocation2 + $0x24] sm:$0xf] %vm1111_vm9, %v1034_v27 }
  0xfa   : > { %v1032_v1 = vpop.permute.xlu0 %1031  ;;  %1305 = vrot.lane.b32.xlu1 %v4781_v2, %s2892_s11 }
  0xfb   : > { %1120 = vst.msk [vmem:[#allocation2 + $0x20] sm:$0xf] %vm1111_vm9, %v1032_v1  ;;  %v4785_v1 = vld [vmem:[#allocation16_spill] sm:$0xff] }
  0xfc   : > { %1303 = vrot.lane.b32.xlu0 %v4782_v25, %s2892_s11  ;;  %v1038_v30 = vpop.permute.xlu1 %1037 }
  0xfd   : > { %1123 = vst.msk [vmem:[#allocation2 + $0x2c] sm:$0xf] %vm1111_vm9, %v1038_v30  ;;  %v4786_v30 = vld [vmem:[#allocation18_spill] sm:$0xff] }
  0xfe   : > { %v1036_v63 = vpop.permute.xlu0 %1035  ;;  %1309 = vrot.lane.b32.xlu1 %v4783_v44, %s2892_s11 }
  0xff   : > { %1122 = vst.msk [vmem:[#allocation2 + $0x28] sm:$0xf] %vm1111_vm9, %v1036_v63 }
 0x100   : > { %1307 = vrot.lane.b32.xlu0 %v4784_v3, %s2892_s11  ;;  %v1042_v48 = vpop.permute.xlu1 %1041 }
 0x101   : > { %1125 = vst.msk [vmem:[#allocation2 + $0x34] sm:$0xf] %vm1111_vm9, %v1042_v48  ;;  %v4788_v48 = vld [vmem:[#allocation23_spill] sm:$0xff] }
 0x102   : > { %v1040_v27 = vpop.permute.xlu0 %1039  ;;  %1313 = vrot.lane.b32.xlu1 %v4785_v1, %s2892_s11 }
 0x103   : > { %1124 = vst.msk [vmem:[#allocation2 + $0x30] sm:$0xf] %vm1111_vm9, %v1040_v27 }
 0x104   : > { %1311 = vrot.lane.b32.xlu0 %v4786_v30, %s2892_s11  ;;  %v1046_v42 = vpop.permute.xlu1 %1045 }
 0x105   : > { %1127 = vst.msk [vmem:[#allocation2 + $0x3c] sm:$0xf] %vm1111_vm9, %v1046_v42  ;;  %v4790_v42 = vld [vmem:[#allocation33_spill] sm:$0xff] }
 0x106   : > { %v1044_v63 = vpop.permute.xlu0 %1043  ;;  %1331 = vrot.lane.b32.xlu1 %v4787_v5, %s2892_s11 }
 0x107   : > { %1126 = vst.msk [vmem:[#allocation2 + $0x38] sm:$0xf] %vm1111_vm9, %v1044_v63 }
 0x108   : > { %1315 = vrot.lane.b32.xlu0 %v4788_v48, %s2892_s11  ;;  %v1050_v59 = vpop.permute.xlu1 %1049 }
 0x109   : > { %1129 = vst.msk [vmem:[#allocation2 + $0x44] sm:$0xf] %vm1111_vm9, %v1050_v59  ;;  %v4791_v59 = vld [vmem:[#allocation35_spill] sm:$0xff] }
 0x10a   : > { %v1048_v27 = vpop.permute.xlu0 %1047  ;;  %1335 = vrot.lane.b32.xlu1 %v4789_v51, %s2892_s11 }
 0x10b   : > { %1128 = vst.msk [vmem:[#allocation2 + $0x40] sm:$0xf] %vm1111_vm9, %v1048_v27 }
 0x10c   : > { %1333 = vrot.lane.b32.xlu0 %v4790_v42, %s2892_s11  ;;  %v1054_v0 = vpop.permute.xlu1 %1053 }
 0x10d   : > { %1131 = vst.msk [vmem:[#allocation2 + $0x4c] sm:$0xf] %vm1111_vm9, %v1054_v0 }
 0x10e   : > { %v1052_v63 = vpop.permute.xlu0 %1051  ;;  %1436 = vrot.lane.b32.xlu1 %v3532_v11, %s2893_s12 }
 0x10f   : > { %1130 = vst.msk [vmem:[#allocation2 + $0x48] sm:$0xf] %vm1111_vm9, %v1052_v63 }
 0x110   : > { %1337 = vrot.lane.b32.xlu0 %v4791_v59, %s2892_s11  ;;  %v1058_v27 = vpop.permute.xlu1 %1057 }
 0x111   : > { %1133 = vst.msk [vmem:[#allocation2 + $0x54] sm:$0xf] %vm1111_vm9, %v1058_v27 }
 0x112   : > { %v1056_v5 = vpop.permute.xlu0 %1055  ;;  %1468 = vrot.lane.b32.xlu1 %v3652_v40, %s2893_s12 }
 0x113   : > { %1132 = vst.msk [vmem:[#allocation2 + $0x50] sm:$0xf] %vm1111_vm9, %v1056_v5 }
 0x114   : > { %1438 = vrot.lane.b32.xlu0 %v3526_v19, %s2893_s12  ;;  %v1062_v0 = vpop.permute.xlu1 %1061 }
 0x115   : > { %1135 = vst.msk [vmem:[#allocation2 + $0x5c] sm:$0xf] %vm1111_vm9, %v1062_v0 }
 0x116   : > { %v1060_v63 = vpop.permute.xlu0 %1059  ;;  %1440 = vrot.lane.b32.xlu1 %v3547_v62, %s2893_s12 }
 0x117   : > { %1134 = vst.msk [vmem:[#allocation2 + $0x58] sm:$0xf] %vm1111_vm9, %v1060_v63 }
 0x118   : > { %1470 = vrot.lane.b32.xlu0 %v3646_v4, %s2893_s12  ;;  %v1066_v11 = vpop.permute.xlu1 %1065 }
 0x119   : > { %1137 = vst.msk [vmem:[#allocation2 + $0x64] sm:$0xf] %vm1111_vm9, %v1066_v11 }
 0x11a   : > { %v1064_v5 = vpop.permute.xlu0 %1063  ;;  %1472 = vrot.lane.b32.xlu1 %v3667_v29, %s2893_s12 }
 0x11b   : > { %1136 = vst.msk [vmem:[#allocation2 + $0x60] sm:$0xf] %vm1111_vm9, %v1064_v5 }
 0x11c   : > { %1442 = vrot.lane.b32.xlu0 %v3541_v47, %s2893_s12  ;;  %v1070_v19 = vpop.permute.xlu1 %1069 }
 0x11d   : > { %1139 = vst.msk [vmem:[#allocation2 + $0x6c] sm:$0xf] %vm1111_vm9, %v1070_v19  ;;  %v2785_v19 = vld [vmem:[%s4624_s1 + $0x30] sm:$0xff]  }
 0x11e   : > { %v1068_v27 = vpop.permute.xlu0 %1067  ;;  %1567 = vrot.lane.b32.xlu1 %v3074_v34, %s2894_s13  ;;  %v2784_v34 = vld [vmem:[%s4624_s1 + $0x38] sm:$0xff]  }
 0x11f   : > { %1138 = vst.msk [vmem:[#allocation2 + $0x68] sm:$0xf] %vm1111_vm9, %v1068_v27  ;;  %2654 = vmatprep.subr.bf16.mxu0 %v2784_v34  ;;  %2702 = vmatprep.subr.bf16.mxu1 %v2784_v34  ;;  %v2786_v27 = vld [vmem:[%s4624_s1 + $0x28] sm:$0xff]  }
 0x120   : > { %1474 = vrot.lane.b32.xlu0 %v3661_v15, %s2893_s12  ;;  %v1074_v0 = vpop.permute.xlu1 %1073  ;;  %2655 = vmatpush3.bf16.msra.mxu0 %v2784_v34 }
 0x121   : > { %1141 = vst.msk [vmem:[#allocation2 + $0x74] sm:$0xf] %vm1111_vm9, %v1074_v0  ;;  %2710 = vmatpush3.bf16.msra.mxu1 %v2784_v34  ;;  %2656 = vmatprep.subr.bf16.mxu0 %v2785_v19  ;;  %v2787_v0 = vld [vmem:[%s4624_s1 + $0x20] sm:$0xff]   ;;  %v2790_v34 = vld [vmem:[%s4624_s1 + $0x8] sm:$0xff]  }
 0x122   : > { %v1072_v63 = vpop.permute.xlu0 %1071  ;;  %1599 = vrot.lane.b32.xlu1 %v4774_v46, %s2894_s13  ;;  %2703 = vmatprep.subr.bf16.mxu1 %v2785_v19 }
 0x123   : > { %1140 = vst.msk [vmem:[#allocation2 + $0x70] sm:$0xf] %vm1111_vm9, %v1072_v63  ;;  %v2788_v63 = vld [vmem:[%s4624_s1 + $0x18] sm:$0xff]  }
 0x124   : > { %1569 = vrot.lane.b32.xlu0 %v3057_v23, %s2894_s13  ;;  %v1078_v11 = vpop.permute.xlu1 %1077  ;;  %2657 = vmatpush3.bf16.msra.mxu0 %v2785_v19 }
 0x125   : > { %1143 = vst.msk [vmem:[#allocation2 + $0x7c] sm:$0xf] %vm1111_vm9, %v1078_v11  ;;  %2711 = vmatpush3.bf16.msra.mxu1 %v2785_v19  ;;  %2658 = vmatprep.subr.bf16.mxu0 %v2786_v27  ;;  %v2789_v11 = vld [vmem:[%s4624_s1 + $0x10] sm:$0xff]   ;;  %v2792_v19 = vld [vmem:[%s4624_s1] sm:$0xff]  }
 0x126   : > { %v1076_v5 = vpop.permute.xlu0 %1075  ;;  %1571 = vrot.lane.b32.xlu1 %v3088_v45, %s2894_s13  ;;  %2704 = vmatprep.subr.bf16.mxu1 %v2786_v27 }
 0x127   : > { %1142 = vst.msk [vmem:[#allocation2 + $0x78] sm:$0xf] %vm1111_vm9, %v1076_v5  ;;  %v4792_v5 = vld [vmem:[#allocation38_spill] sm:$0xff] }
 0x128   : > { %1601 = vrot.lane.b32.xlu0 %v3228_v22, %s2894_s13  ;;  %v1149_v46 = vpop.permute.xlu1 %1148  ;;  %2659 = vmatpush3.bf16.msra.mxu0 %v2786_v27 }
 0x129   : > { %1244 = vst.msk [vmem:[#allocation2 + $0x4] sm:$0xf] %vm1242_vm10, %v1149_v46  ;;  %2712 = vmatpush3.bf16.msra.mxu1 %v2786_v27  ;;  %2660 = vmatprep.subr.bf16.mxu0 %v2787_v0 }
 0x12a   : > { %v1147_v23 = vpop.permute.xlu0 %1146  ;;  %1603 = vrot.lane.b32.xlu1 %v4777_v53, %s2894_s13  ;;  %2705 = vmatprep.subr.bf16.mxu1 %v2787_v0 }
 0x12b   : > { %1243 = vst.msk [vmem:[#allocation2] sm:$0xf] %vm1242_vm10, %v1147_v23 }
 0x12c   : > { %1573 = vrot.lane.b32.xlu0 %v3077_v35, %s2894_s13  ;;  %v1153_v45 = vpop.permute.xlu1 %1152  ;;  %2661 = vmatpush3.bf16.msra.mxu0 %v2787_v0 }
 0x12d   : > { %1246 = vst.msk [vmem:[#allocation2 + $0xc] sm:$0xf] %vm1242_vm10, %v1153_v45  ;;  %2713 = vmatpush3.bf16.msra.mxu1 %v2787_v0  ;;  %2662 = vmatprep.subr.bf16.mxu0 %v2788_v63 }
 0x12e   : > { %v1151_v22 = vpop.permute.xlu0 %1150  ;;  %1720 = vrot.lane.b32.xlu1 %v4782_v25, %s2895_s30  ;;  %2706 = vmatprep.subr.bf16.mxu1 %v2788_v63 }
 0x12f   : > { %1245 = vst.msk [vmem:[#allocation2 + $0x8] sm:$0xf] %vm1242_vm10, %v1151_v22 }
 0x130   : > { %1605 = vrot.lane.b32.xlu0 %v3252_v54, %s2894_s13  ;;  %v1157_v35 = vpop.permute.xlu1 %1156  ;;  %2663 = vmatpush3.bf16.msra.mxu0 %v2788_v63 }
 0x131   : > { %1248 = vst.msk [vmem:[#allocation2 + $0x14] sm:$0xf] %vm1242_vm10, %v1157_v35  ;;  %2714 = vmatpush3.bf16.msra.mxu1 %v2788_v63  ;;  %2664 = vmatprep.subr.bf16.mxu0 %v2789_v11 }
 0x132   : > { %v1155_v53 = vpop.permute.xlu0 %1154  ;;  %1752 = vrot.lane.b32.xlu1 %v4789_v51, %s2895_s30  ;;  %2707 = vmatprep.subr.bf16.mxu1 %v2789_v11 }
 0x133   : > { %1247 = vst.msk [vmem:[#allocation2 + $0x10] sm:$0xf] %vm1242_vm10, %v1155_v53  ;;  %v4794_v53 = vld [vmem:[#allocation40_spill] sm:$0xff] }
 0x134   : > { %1722 = vrot.lane.b32.xlu0 %v4781_v2, %s2895_s30  ;;  %v1161_v54 = vpop.permute.xlu1 %1160  ;;  %2665 = vmatpush3.bf16.msra.mxu0 %v2789_v11 }
 0x135   : > { %1250 = vst.msk [vmem:[#allocation2 + $0x1c] sm:$0xf] %vm1242_vm10, %v1161_v54  ;;  %2715 = vmatpush3.bf16.msra.mxu1 %v2789_v11  ;;  %2666 = vmatprep.subr.bf16.mxu0 %v2790_v34 }
 0x136   : > { %v1159_v25 = vpop.permute.xlu0 %1158  ;;  %1724 = vrot.lane.b32.xlu1 %v4784_v3, %s2895_s30  ;;  %2708 = vmatprep.subr.bf16.mxu1 %v2790_v34 }
 0x137   : > { %1249 = vst.msk [vmem:[#allocation2 + $0x18] sm:$0xf] %vm1242_vm10, %v1159_v25  ;;  %v4795_v25 = vld [vmem:[#allocation39_spill] sm:$0xff] }
 0x138   : > { %1754 = vrot.lane.b32.xlu0 %v4791_v59, %s2895_s30  ;;  %v1165_v51 = vpop.permute.xlu1 %1164  ;;  %2667 = vmatpush3.bf16.msra.mxu0 %v2790_v34 }
 0x139   : > { %1252 = vst.msk [vmem:[#allocation2 + $0x24] sm:$0xf] %vm1242_vm10, %v1165_v51  ;;  %2716 = vmatpush3.bf16.msra.mxu1 %v2790_v34  ;;  %2668 = vmatprep.subr.bf16.mxu0 %v2792_v19 }
 0x13a   : > { %v1163_v2 = vpop.permute.xlu0 %1162  ;;  %1756 = vrot.lane.b32.xlu1 %v4792_v5, %s2895_s30  ;;  %2709 = vmatprep.subr.bf16.mxu1 %v2792_v19 }
 0x13b   : > { %1251 = vst.msk [vmem:[#allocation2 + $0x20] sm:$0xf] %vm1242_vm10, %v1163_v2 }
 0x13c   : > { %1726 = vrot.lane.b32.xlu0 %v4783_v44, %s2895_s30  ;;  %v1169_v3 = vpop.permute.xlu1 %1168  ;;  %v4793_v44 = vld [vmem:[#allocation37_spill] sm:$0xff]  ;;  %2669 = vmatpush3.bf16.msra.mxu0 %v2792_v19 }
 0x13d   : > { %1254 = vst.msk [vmem:[#allocation2 + $0x2c] sm:$0xf] %vm1242_vm10, %v1169_v3  ;;  %2717 = vmatpush3.bf16.msra.mxu1 %v2792_v19 }
 0x13e   : > { %v1167_v59 = vpop.permute.xlu0 %1166  ;;  %1857 = vrot.lane.b32.xlu1 %v3547_v62, %s2896_s26 }
 0x13f   : > { %1253 = vst.msk [vmem:[#allocation2 + $0x28] sm:$0xf] %vm1242_vm10, %v1167_v59 }
 0x140   : > { %1758 = vrot.lane.b32.xlu0 %v4793_v44, %s2895_s30  ;;  %v1173_v46 = vpop.permute.xlu1 %1172 }
 0x141   : > { %1256 = vst.msk [vmem:[#allocation2 + $0x34] sm:$0xf] %vm1242_vm10, %v1173_v46 }
 0x142   : > { %v1171_v23 = vpop.permute.xlu0 %1170  ;;  %1889 = vrot.lane.b32.xlu1 %v3667_v29, %s2896_s26 }
 0x143   : > { %1255 = vst.msk [vmem:[#allocation2 + $0x30] sm:$0xf] %vm1242_vm10, %v1171_v23 }
 0x144   : > { %1859 = vrot.lane.b32.xlu0 %v3541_v47, %s2896_s26  ;;  %v1177_v62 = vpop.permute.xlu1 %1176 }
 0x145   : > { %1258 = vst.msk [vmem:[#allocation2 + $0x3c] sm:$0xf] %vm1242_vm10, %v1177_v62 }
 0x146   : > { %v1175_v45 = vpop.permute.xlu0 %1174  ;;  %1861 = vrot.lane.b32.xlu1 %v3562_v18, %s2896_s26 }
 0x147   : > { %1257 = vst.msk [vmem:[#allocation2 + $0x38] sm:$0xf] %vm1242_vm10, %v1175_v45 }
 0x148   : > { %1891 = vrot.lane.b32.xlu0 %v3661_v15, %s2896_s26  ;;  %v1181_v29 = vpop.permute.xlu1 %1180 }
 0x149   : > { %1260 = vst.msk [vmem:[#allocation2 + $0x44] sm:$0xf] %vm1242_vm10, %v1181_v29 }
 0x14a   : > { %v1179_v47 = vpop.permute.xlu0 %1178  ;;  %1893 = vrot.lane.b32.xlu1 %v3682_v6, %s2896_s26 }
 0x14b   : > { %1259 = vst.msk [vmem:[#allocation2 + $0x40] sm:$0xf] %vm1242_vm10, %v1179_v47 }
 0x14c   : > { %1863 = vrot.lane.b32.xlu0 %v3556_v56, %s2896_s26  ;;  %v1185_v22 = vpop.permute.xlu1 %1184 }
 0x14d   : > { %1262 = vst.msk [vmem:[#allocation2 + $0x4c] sm:$0xf] %vm1242_vm10, %v1185_v22 }
 0x14e   : > { %v1183_v27 = vpop.permute.xlu0 %1182  ;;  %1339 = vrot.lane.b32.xlu1 %v4792_v5, %s2892_s11 }
 0x14f   : > { %1261 = vst.msk [vmem:[#allocation2 + $0x48] sm:$0xf] %vm1242_vm10, %v1183_v27 }
 0x150   : > { %1895 = vrot.lane.b32.xlu0 %v3676_v32, %s2896_s26  ;;  %v1189_v15 = vpop.permute.xlu1 %1188 }
 0x151   : > { %1264 = vst.msk [vmem:[#allocation2 + $0x54] sm:$0xf] %vm1242_vm10, %v1189_v15 }
 0x152   : > { %v1187_v35 = vpop.permute.xlu0 %1186  ;;  %1343 = vrot.lane.b32.xlu1 %v4794_v53, %s2892_s11 }
 0x153   : > { %1263 = vst.msk [vmem:[#allocation2 + $0x50] sm:$0xf] %vm1242_vm10, %v1187_v35 }
 0x154   : > { %1341 = vrot.lane.b32.xlu0 %v4793_v44, %s2892_s11  ;;  %v1193_v0 = vpop.permute.xlu1 %1192 }
 0x155   : > { %1266 = vst.msk [vmem:[#allocation2 + $0x5c] sm:$0xf] %vm1242_vm10, %v1193_v0  ;;  %v4800_v0 = vld [vmem:[#allocation25_spill] sm:$0xff] }
 0x156   : > { %v1191_v54 = vpop.permute.xlu0 %1190  ;;  %1444 = vrot.lane.b32.xlu1 %v3562_v18, %s2893_s12 }
 0x157   : > { %1265 = vst.msk [vmem:[#allocation2 + $0x58] sm:$0xf] %vm1242_vm10, %v1191_v54 }
 0x158   : > { %1345 = vrot.lane.b32.xlu0 %v4795_v25, %s2892_s11  ;;  %v1197_v63 = vpop.permute.xlu1 %1196 }
 0x159   : > { %1268 = vst.msk [vmem:[#allocation2 + $0x64] sm:$0xf] %vm1242_vm10, %v1197_v63 }
 0x15a   : > { %v1195_v51 = vpop.permute.xlu0 %1194  ;;  %1476 = vrot.lane.b32.xlu1 %v3682_v6, %s2893_s12 }
 0x15b   : > { %1267 = vst.msk [vmem:[#allocation2 + $0x60] sm:$0xf] %vm1242_vm10, %v1195_v51 }
 0x15c   : > { %1446 = vrot.lane.b32.xlu0 %v3556_v56, %s2893_s12  ;;  %v1201_v2 = vpop.permute.xlu1 %1200 }
 0x15d   : > { %1270 = vst.msk [vmem:[#allocation2 + $0x6c] sm:$0xf] %vm1242_vm10, %v1201_v2 }
 0x15e   : > { %v1199_v11 = vpop.permute.xlu0 %1198  ;;  %1448 = vrot.lane.b32.xlu1 %v3577_v21, %s2893_s12 }
 0x15f   : > { %1269 = vst.msk [vmem:[#allocation2 + $0x68] sm:$0xf] %vm1242_vm10, %v1199_v11 }
 0x160   : > { %1478 = vrot.lane.b32.xlu0 %v3676_v32, %s2893_s12  ;;  %v1205_v18 = vpop.permute.xlu1 %1204 }
 0x161   : > { %1272 = vst.msk [vmem:[#allocation2 + $0x74] sm:$0xf] %vm1242_vm10, %v1205_v18 }
 0x162   : > { %v1203_v5 = vpop.permute.xlu0 %1202  ;;  %1480 = vrot.lane.b32.xlu1 %v3697_v7, %s2893_s12 }
 0x163   : > { %1271 = vst.msk [vmem:[#allocation2 + $0x70] sm:$0xf] %vm1242_vm10, %v1203_v5 }
 0x164   : > { %1450 = vrot.lane.b32.xlu0 %v3571_v14, %s2893_s12  ;;  %v1209_v56 = vpop.permute.xlu1 %1208 }
 0x165   : > { %1274 = vst.msk [vmem:[#allocation2 + $0x7c] sm:$0xf] %vm1242_vm10, %v1209_v56  ;;  %v4803_v56 = vld [vmem:[#allocation48_spill] sm:$0xff] }
 0x166   : > { %v1207_v6 = vpop.permute.xlu0 %1206  ;;  %1575 = vrot.lane.b32.xlu1 %v3110_v55, %s2894_s13 }
 0x167   : > { %1273 = vst.msk [vmem:[#allocation2 + $0x78] sm:$0xf] %vm1242_vm10, %v1207_v6  ;;  %v4804_v6 = vld [vmem:[#allocation49_spill] sm:$0xff] }
 0x168   : > { %1482 = vrot.lane.b32.xlu0 %v3691_v39, %s2893_s12  ;;  %v1302_v32 = vpop.permute.xlu1 %1301 }
 0x169   : > { %1397 = vst.msk [vmem:[#allocation2 + $0x4] sm:$0xf] %vm1395_vm11, %v1302_v32 }
 0x16a   : > { %v1300_v3 = vpop.permute.xlu0 %1299  ;;  %1607 = vrot.lane.b32.xlu1 %v3284_v38, %s2894_s13 }
 0x16b   : > { %1396 = vst.msk [vmem:[#allocation2] sm:$0xf] %vm1395_vm11, %v1300_v3 }
 0x16c   : > { %1577 = vrot.lane.b32.xlu0 %v3097_v50, %s2894_s13  ;;  %v1306_v59 = vpop.permute.xlu1 %1305 }
 0x16d   : > { %1399 = vst.msk [vmem:[#allocation2 + $0xc] sm:$0xf] %vm1395_vm11, %v1306_v59 }
 0x16e   : > { %v1304_v55 = vpop.permute.xlu0 %1303  ;;  %1579 = vrot.lane.b32.xlu1 %v3134_v10, %s2894_s13 }
 0x16f   : > { %1398 = vst.msk [vmem:[#allocation2 + $0x8] sm:$0xf] %vm1395_vm11, %v1304_v55 }
 0x170   : > { %1609 = vrot.lane.b32.xlu0 %v4776_v33, %s2894_s13  ;;  %v1310_v34 = vpop.permute.xlu1 %1309 }
 0x171   : > { %1401 = vst.msk [vmem:[#allocation2 + $0x14] sm:$0xf] %vm1395_vm11, %v1310_v34 }
 0x172   : > { %v1308_v44 = vpop.permute.xlu0 %1307  ;;  %1611 = vrot.lane.b32.xlu1 %v3308_v9, %s2894_s13 }
 0x173   : > { %1400 = vst.msk [vmem:[#allocation2 + $0x10] sm:$0xf] %vm1395_vm11, %v1308_v44 }
 0x174   : > { %1581 = vrot.lane.b32.xlu0 %v3119_v60, %s2894_s13  ;;  %v1314_v50 = vpop.permute.xlu1 %1313 }
 0x175   : > { %1403 = vst.msk [vmem:[#allocation2 + $0x1c] sm:$0xf] %vm1395_vm11, %v1314_v50 }
 0x176   : > { %v1312_v38 = vpop.permute.xlu0 %1311  ;;  %1728 = vrot.lane.b32.xlu1 %v4786_v30, %s2895_s30 }
 0x177   : > { %1402 = vst.msk [vmem:[#allocation2 + $0x18] sm:$0xf] %vm1395_vm11, %v1312_v38 }
 0x178   : > { %1613 = vrot.lane.b32.xlu0 %v3292_v49, %s2894_s13  ;;  %v1332_v10 = vpop.permute.xlu1 %1331 }
 0x179   : > { %1412 = vst.msk [vmem:[#allocation2 + $0x40] sm:$0xf] %vm1395_vm11, %v1332_v10 }
 0x17a   : > { %v1316_v33 = vpop.permute.xlu0 %1315  ;;  %1760 = vrot.lane.b32.xlu1 %v4794_v53, %s2895_s30  ;;  %v4799_v53 = vld [vmem:[#allocation24_spill] sm:$0xff] }
 0x17b   : > { %1404 = vst.msk [vmem:[#allocation2 + $0x20] sm:$0xf] %vm1395_vm11, %v1316_v33 }
 0x17c   : > { %1730 = vrot.lane.b32.xlu0 %v4785_v1, %s2895_s30  ;;  %v1336_v60 = vpop.permute.xlu1 %1335  ;;  %v4796_v1 = vld [vmem:[#allocation20_spill] sm:$0xff] }
 0x17d   : > { %1414 = vst.msk [vmem:[#allocation2 + $0x48] sm:$0xf] %vm1395_vm11, %v1336_v60  ;;  %v4805_v60 = vld [vmem:[#allocation27_spill] sm:$0xff] }
 0x17e   : > { %v1334_v9 = vpop.permute.xlu0 %1333  ;;  %1732 = vrot.lane.b32.xlu1 %v4788_v48, %s2895_s30 }
 0x17f   : > { %1413 = vst.msk [vmem:[#allocation2 + $0x44] sm:$0xf] %vm1395_vm11, %v1334_v9  ;;  %v4806_v9 = vld [vmem:[#allocation29_spill] sm:$0xff] }
 0x180   : > { %1762 = vrot.lane.b32.xlu0 %v4795_v25, %s2895_s30  ;;  %v1437_v49 = vpop.permute.xlu1 %1436  ;;  %v4802_v25 = vld [vmem:[#allocation43_spill] sm:$0xff] }
 0x181   : > { %1533 = vst.msk [vmem:[#allocation2] sm:$0xf] %vm1532_vm12, %v1437_v49 }
 0x182   : > { %v1338_v30 = vpop.permute.xlu0 %1337  ;;  %1764 = vrot.lane.b32.xlu1 %v3474_v61, %s2895_s30 }
 0x183   : > { %1415 = vst.msk [vmem:[#allocation2 + $0x4c] sm:$0xf] %vm1395_vm11, %v1338_v30 }
 0x184   : > { %1734 = vrot.lane.b32.xlu0 %v4796_v1, %s2895_s30  ;;  %v1469_v46 = vpop.permute.xlu1 %1468 }
 0x185   : > { %1549 = vst.msk [vmem:[#allocation2 + $0x40] sm:$0xf] %vm1532_vm12, %v1469_v46  ;;  %v4808_v46 = vld [vmem:[#allocation45_spill] sm:$0xff] }
 0x186   : > { %v1439_v48 = vpop.permute.xlu0 %1438  ;;  %1865 = vrot.lane.b32.xlu1 %v3577_v21, %s2896_s26  ;;  %v4797_v21 = vld [vmem:[#allocation47_spill] sm:$0xff] }
 0x187   : > { %1534 = vst.msk [vmem:[#allocation2 + $0x4] sm:$0xf] %vm1532_vm12, %v1439_v48 }
 0x188   : > { %1766 = vrot.lane.b32.xlu0 %v3467_v31, %s2895_s30  ;;  %v1441_v23 = vpop.permute.xlu1 %1440 }
 0x189   : > { %1535 = vst.msk [vmem:[#allocation2 + $0x8] sm:$0xf] %vm1532_vm12, %v1441_v23 }
 0x18a   : > { %v1471_v19 = vpop.permute.xlu0 %1470  ;;  %1897 = vrot.lane.b32.xlu1 %v3697_v7, %s2896_s26 }
 0x18b   : > { %1550 = vst.msk [vmem:[#allocation2 + $0x44] sm:$0xf] %vm1532_vm12, %v1471_v19 }
 0x18c   : > { %1867 = vrot.lane.b32.xlu0 %v3571_v14, %s2896_s26  ;;  %v1473_v62 = vpop.permute.xlu1 %1472  ;;  %v4798_v14 = vld [vmem:[#allocation46_spill] sm:$0xff] }
 0x18d   : > { %1551 = vst.msk [vmem:[#allocation2 + $0x48] sm:$0xf] %vm1532_vm12, %v1473_v62 }
 0x18e   : > { %v1443_v45 = vpop.permute.xlu0 %1442  ;;  %1869 = vrot.lane.b32.xlu1 %v4797_v21, %s2896_s26 }
 0x18f   : > { %1536 = vst.msk [vmem:[#allocation2 + $0xc] sm:$0xf] %vm1532_vm12, %v1443_v45 }
 0x190   : > { %1899 = vrot.lane.b32.xlu0 %v3691_v39, %s2896_s26  ;;  %v1568_v29 = vpop.permute.xlu1 %1567 }
 0x191   : > { %1664 = vst.msk [vmem:[#allocation2] sm:$0xf] %vm1663_vm13, %v1568_v29  ;;  %v4809_v29 = vld [vmem:[#allocation50_spill] sm:$0xff] }
 0x192   : > { %v1475_v7 = vpop.permute.xlu0 %1474  ;;  %1901 = vrot.lane.b32.xlu1 %v3712_v58, %s2896_s26 }
 0x193   : > { %1552 = vst.msk [vmem:[#allocation2 + $0x4c] sm:$0xf] %vm1532_vm12, %v1475_v7  ;;  %v4810_v7 = vld [vmem:[#allocation51_spill] sm:$0xff] }
 0x194   : > { %1871 = vrot.lane.b32.xlu0 %v4798_v14, %s2896_s26  ;;  %v1600_v47 = vpop.permute.xlu1 %1599 }
 0x195   : > { %1680 = vst.msk [vmem:[#allocation2 + $0x40] sm:$0xf] %vm1663_vm13, %v1600_v47 }
 0x196   : > { %v1570_v22 = vpop.permute.xlu0 %1569  ;;  %1317 = vrot.lane.b32.xlu1 %v4796_v1, %s2892_s11  ;;  %v4807_v1 = vld [vmem:[#allocation44_spill] sm:$0xff] }
 0x197   : > { %1665 = vst.msk [vmem:[#allocation2 + $0x4] sm:$0xf] %vm1663_vm13, %v1570_v22  ;;  %v1279_v22 = vshll.u32 %v3845_v57, 16 }
 0x198   : > { %1903 = vrot.lane.b32.xlu0 %v3706_v36, %s2896_s26  ;;  %v1572_v39 = vpop.permute.xlu1 %1571 }
 0x199   : > { %1666 = vst.msk [vmem:[#allocation2 + $0x8] sm:$0xf] %vm1663_vm13, %v1572_v39 }
 0x19a   : > { %v1602_v27 = vpop.permute.xlu0 %1601  ;;  %1349 = vrot.lane.b32.xlu1 %v3467_v31, %s2892_s11 }
 0x19b   : > { %1681 = vst.msk [vmem:[#allocation2 + $0x44] sm:$0xf] %vm1663_vm13, %v1602_v27 }
 0x19c   : > { %1347 = vrot.lane.b32.xlu0 %v3474_v61, %s2892_s11  ;;  %v1604_v15 = vpop.permute.xlu1 %1603  ;;  %v4801_v61 = vld [vmem:[#allocation41_spill] sm:$0xff] }
 0x19d   : > { %1682 = vst.msk [vmem:[#allocation2 + $0x48] sm:$0xf] %vm1663_vm13, %v1604_v15 }
 0x19e   : > { %v1574_v35 = vpop.permute.xlu0 %1573  ;;  %1321 = vrot.lane.b32.xlu1 %v4799_v53, %s2892_s11 }
 0x19f   : > { %1667 = vst.msk [vmem:[#allocation2 + $0xc] sm:$0xf] %vm1663_vm13, %v1574_v35 }
 0x1a0   : > { %1319 = vrot.lane.b32.xlu0 %v4800_v0, %s2892_s11  ;;  %v1721_v54 = vpop.permute.xlu1 %1720 }
 0x1a1   : > { %1817 = vst.msk [vmem:[#allocation2] sm:$0xf] %vm1816_vm14, %v1721_v54  ;;  %v1281_v54 = vrot.slane %v1279_v22, 5  ;;  %v4332_v22 = vld [vmem:[%s3019_s7 + $0xcc] sm:$0xf] }
 0x1a2   : > { %v1606_v31 = vpop.permute.xlu0 %1605  ;;  %1353 = vrot.lane.b32.xlu1 %v4801_v61, %s2892_s11 }
 0x1a3   : > { %1683 = vst.msk [vmem:[#allocation2 + $0x4c] sm:$0xf] %vm1663_vm13, %v1606_v31 }
 0x1a4   : > { %1351 = vrot.lane.b32.xlu0 %v4802_v25, %s2892_s11  ;;  %v1753_v63 = vpop.permute.xlu1 %1752 }
 0x1a5   : > { %1833 = vst.msk [vmem:[#allocation2 + $0x40] sm:$0xf] %vm1816_vm14, %v1753_v63 }
 0x1a6   : > { %v1723_v51 = vpop.permute.xlu0 %1722  ;;  %1454 = vrot.lane.b32.xlu1 %v4798_v14, %s2893_s12  ;;  %v1285_v14 = vshll.u32 %v3842_v20, 16 }
 0x1a7   : > { %1818 = vst.msk [vmem:[#allocation2 + $0x4] sm:$0xf] %vm1816_vm14, %v1723_v51 }
 0x1a8   : > { %1452 = vrot.lane.b32.xlu0 %v4797_v21, %s2893_s12  ;;  %v1725_v2 = vpop.permute.xlu1 %1724  ;;  %v1287_v27 = vrot.slane %v1285_v14, 5  ;;  %v4325_v14 = vld [vmem:[%s3019_s7 + $0xd0] sm:$0xf] }
 0x1a9   : > { %1819 = vst.msk [vmem:[#allocation2 + $0x8] sm:$0xf] %vm1816_vm14, %v1725_v2 }
 0x1aa   : > { %v1755_v11 = vpop.permute.xlu0 %1754  ;;  %1486 = vrot.lane.b32.xlu1 %v3706_v36, %s2893_s12 }
 0x1ab   : > { %1834 = vst.msk [vmem:[#allocation2 + $0x44] sm:$0xf] %vm1816_vm14, %v1755_v11 }
 0x1ac   : > { %1484 = vrot.lane.b32.xlu0 %v3712_v58, %s2893_s12  ;;  %v1757_v18 = vpop.permute.xlu1 %1756 }
 0x1ad   : > { %1835 = vst.msk [vmem:[#allocation2 + $0x48] sm:$0xf] %vm1816_vm14, %v1757_v18 }
 0x1ae   : > { %v1727_v5 = vpop.permute.xlu0 %1726  ;;  %1458 = vrot.lane.b32.xlu1 %v4803_v56, %s2893_s12 }
 0x1af   : > { %1820 = vst.msk [vmem:[#allocation2 + $0xc] sm:$0xf] %vm1816_vm14, %v1727_v5 }
 0x1b0   : > { %1456 = vrot.lane.b32.xlu0 %v4804_v6, %s2893_s12  ;;  %v1858_v32 = vpop.permute.xlu1 %1857 }
 0x1b1   : > { %1954 = vst.msk [vmem:[#allocation2] sm:$0xf] %vm1953_vm15, %v1858_v32  ;;  %v4811_v32 = vld [vmem:[#allocation30_spill] sm:$0xff] }
 0x1b2   : > { %v1759_v36 = vpop.permute.xlu0 %1758  ;;  %1490 = vrot.lane.b32.xlu1 %v3723_v17, %s2893_s12 }
 0x1b3   : > { %1836 = vst.msk [vmem:[#allocation2 + $0x4c] sm:$0xf] %vm1816_vm14, %v1759_v36  ;;  %v4812_v36 = vld [vmem:[#allocation31_spill] sm:$0xff] }
 0x1b4   : > { %1488 = vrot.lane.b32.xlu0 %v3728_v24, %s2893_s12  ;;  %v1890_v58 = vpop.permute.xlu1 %1889 }
 0x1b5   : > { %1970 = vst.msk [vmem:[#allocation2 + $0x40] sm:$0xf] %vm1953_vm15, %v1890_v58  ;;  %v1852_v58 = vrot.slane %v4325_v14, 5 }
 0x1b6   : > { %v1860_v3 = vpop.permute.xlu0 %1859  ;;  %1585 = vrot.lane.b32.xlu1 %v3143_v16, %s2894_s13 }
 0x1b7   : > { %1955 = vst.msk [vmem:[#allocation2 + $0x4] sm:$0xf] %vm1953_vm15, %v1860_v3 }
 0x1b8   : > { %1583 = vrot.lane.b32.xlu0 %v3155_v28, %s2894_s13  ;;  %v1862_v59 = vpop.permute.xlu1 %1861 }
 0x1b9   : > { %1956 = vst.msk [vmem:[#allocation2 + $0x8] sm:$0xf] %vm1953_vm15, %v1862_v59 }
 0x1ba   : > { %v1892_v55 = vpop.permute.xlu0 %1891  ;;  %1617 = vrot.lane.b32.xlu1 %v3319_v41, %s2894_s13 }
 0x1bb   : > { %1971 = vst.msk [vmem:[#allocation2 + $0x44] sm:$0xf] %vm1953_vm15, %v1892_v55 }
 0x1bc   : > { %1615 = vrot.lane.b32.xlu0 %v4778_v26, %s2894_s13  ;;  %v1894_v34 = vpop.permute.xlu1 %1893 }
 0x1bd   : > { %1972 = vst.msk [vmem:[#allocation2 + $0x48] sm:$0xf] %vm1953_vm15, %v1894_v34 }
 0x1be   : > { %v1864_v44 = vpop.permute.xlu0 %1863  ;;  %v2791_v16 = vld [vmem:[#allocation2] sm:$0xff]   ;;  %1589 = vrot.lane.b32.xlu1 %v3166_v37, %s2894_s13 }
 0x1bf   : > { %1957 = vst.msk [vmem:[#allocation2 + $0xc] sm:$0xf] %vm1953_vm15, %v1864_v44  ;;  %2670 = vmatprep.mubr.bf16.mxu0 %v2791_v16 }
 0x1c0   : > { %1587 = vrot.lane.b32.xlu0 %v3173_v43, %s2894_s13  ;;  %v1340_v28 = vpop.permute.xlu1 %1339 }
 0x1c1   : > { %1416 = vst.msk [vmem:[#allocation2 + $0x50] sm:$0xf] %vm1395_vm11, %v1340_v28  ;;  %v1431_v28 = vrot.slane %v3842_v20, 5 }
 0x1c2   : > { %v1896_v41 = vpop.permute.xlu0 %1895  ;;  %v2793_v50 = vld [vmem:[#allocation2 + $0x40] sm:$0xff]   ;;  %1621 = vrot.lane.b32.xlu1 %v3339_v13, %s2894_s13 }
 0x1c3   : > { %1973 = vst.msk [vmem:[#allocation2 + $0x4c] sm:$0xf] %vm1953_vm15, %v1896_v41  ;;  %2686 = vmatprep.mubr.bf16.mxu1 %v2793_v50 }
 0x1c4   : > { %1619 = vrot.lane.b32.xlu0 %v3356_v12, %s2894_s13  ;;  %v1344_v26 = vpop.permute.xlu1 %1343 }
 0x1c5   : > { %1418 = vst.msk [vmem:[#allocation2 + $0x58] sm:$0xf] %vm1395_vm11, %v1344_v26  ;;  %v1433_v26 = vrot.slane %v1431_v28, 4 }
 0x1c6   : > { %v1342_v37 = vpop.permute.xlu0 %1341  ;;  %v2794_v43 = vld [vmem:[#allocation2 + $0x8] sm:$0xff]   ;;  %1738 = vrot.lane.b32.xlu1 %v4799_v53, %s2895_s30 }
 0x1c7   : > { %1417 = vst.msk [vmem:[#allocation2 + $0x54] sm:$0xf] %vm1395_vm11, %v1342_v37  ;;  %2671 = vmatmul.mubr.bf16.vlgmr.msra.gmra.mxu0 %v2794_v43  ;;  %v266_v53 = vld [vmem:[%s3019_s7 + $0xc8] sm:$0x1] }
 0x1c8   : > { %1736 = vrot.lane.b32.xlu0 %v4800_v0, %s2895_s30  ;;  %v1445_v38 = vpop.permute.xlu1 %1444  ;;  %v1434_v37 = vrot.slane %v266_v53, 5 }
 0x1c9   : > { %1537 = vst.msk [vmem:[#allocation2 + $0x10] sm:$0xf] %vm1532_vm12, %v1445_v38  ;;  %v2596_v38 = vrot.slane %v3845_v57, 9 }
 0x1ca   : > { %v1346_v13 = vpop.permute.xlu0 %1345  ;;  %v2795_v12 = vld [vmem:[#allocation2 + $0x48] sm:$0xff]   ;;  %1770 = vrot.lane.b32.xlu1 %v4801_v61, %s2895_s30 }
 0x1cb   : > { %1419 = vst.msk [vmem:[#allocation2 + $0x5c] sm:$0xf] %vm1395_vm11, %v1346_v13  ;;  %2687 = vmatmul.mubr.bf16.vlgmr.msra.gmra.mxu1 %v2795_v12  ;;  %v4814_v13 = vld [vmem:[#allocation52_spill] sm:$0xff]  ;;  %v4815_v12 = vld [vmem:[#allocation26_spill] sm:$0xff] }
 0x1cc   : > { %1768 = vrot.lane.b32.xlu0 %v4802_v25, %s2895_s30  ;;  %v1477_v10 = vpop.permute.xlu1 %1476  ;;  %v1295_v25 = vshll.u32 %v266_v53, 16 }
 0x1cd   : > { %1553 = vst.msk [vmem:[#allocation2 + $0x50] sm:$0xf] %vm1532_vm12, %v1477_v10  ;;  %v4296_v10 = vsel %vm3487_vm7, %v1433_v26, %v1434_v37  ;;  %v1854_v37 = vrot.slane %v1852_v58, 4 }
 0x1ce   : > { %v1447_v33 = vpop.permute.xlu0 %1446  ;;  %1742 = vrot.lane.b32.xlu1 %v4805_v60, %s2895_s30  ;;  %v1297_v18 = vrot.slane %v1295_v25, 5 }
 0x1cf   : > { %1538 = vst.msk [vmem:[#allocation2 + $0x14] sm:$0xf] %vm1532_vm12, %v1447_v33  ;;  %v4300_v33 = vsel %vm3487_vm7, %v2596_v38, %v1431_v28  ;;  %v2597_v38 = vrot.slane %v4332_v22, 9 }
 0x1d0   : > { %1740 = vrot.lane.b32.xlu0 %v4806_v9, %s2895_s30  ;;  %v1449_v49 = vpop.permute.xlu1 %1448 }
 0x1d1   : > { %1539 = vst.msk [vmem:[#allocation2 + $0x18] sm:$0xf] %vm1532_vm12, %v1449_v49 }
 0x1d2   : > { %v1479_v30 = vpop.permute.xlu0 %1478  ;;  %1774 = vrot.lane.b32.xlu1 %v4807_v1, %s2895_s30 }
 0x1d3   : > { %1554 = vst.msk [vmem:[#allocation2 + $0x54] sm:$0xf] %vm1532_vm12, %v1479_v30  ;;  %v4817_v30 = vld [vmem:[#allocation11_spill] sm:$0xff] }
 0x1d4   : > { %1772 = vrot.lane.b32.xlu0 %v4808_v46, %s2895_s30  ;;  %v1481_v48 = vpop.permute.xlu1 %1480 }
 0x1d5   : > { %1555 = vst.msk [vmem:[#allocation2 + $0x58] sm:$0xf] %vm1532_vm12, %v1481_v48 }
 0x1d6   : > { %v1451_v23 = vpop.permute.xlu0 %1450  ;;  %1875 = vrot.lane.b32.xlu1 %v4803_v56, %s2896_s26 }
 0x1d7   : > { %1540 = vst.msk [vmem:[#allocation2 + $0x1c] sm:$0xf] %vm1532_vm12, %v1451_v23 }
 0x1d8   : > { %1873 = vrot.lane.b32.xlu0 %v4804_v6, %s2896_s26  ;;  %v1576_v19 = vpop.permute.xlu1 %1575 }
 0x1d9   : > { %1668 = vst.msk [vmem:[#allocation2 + $0x10] sm:$0xf] %vm1663_vm13, %v1576_v19  ;;  %v2808_v19 = vld [vmem:[%s3019_s7 + $0xc4] sm:$0xf] }
 0x1da   : > { %v1483_v62 = vpop.permute.xlu0 %1482  ;;  %1907 = vrot.lane.b32.xlu1 %v3723_v17, %s2896_s26  ;;  %v1289_v17 = vshrl.u32 %v3842_v20, 16 }
 0x1db   : > { %1556 = vst.msk [vmem:[#allocation2 + $0x5c] sm:$0xf] %vm1532_vm12, %v1483_v62  ;;  %v2809_v62 = vld [vmem:[%s3019_s7 + $0xc0] sm:$0xf] }
 0x1dc   : > { %1905 = vrot.lane.b32.xlu0 %v3728_v24, %s2896_s26  ;;  %v1608_v45 = vpop.permute.xlu1 %1607  ;;  %v1276_v24 = vshrl.u32 %v3845_v57, 16  ;;  %v1291_v15 = vrot.slane %v1289_v17, 4  ;;  %v4820_v17 = vld [vmem:[#allocation17_spill] sm:$0xff] }
 0x1dd   : > { %1684 = vst.msk [vmem:[#allocation2 + $0x50] sm:$0xf] %vm1663_vm13, %v1608_v45 }
 0x1de   : > { %v1578_v21 = vpop.permute.xlu0 %1577  ;;  %1879 = vrot.lane.b32.xlu1 %v4809_v29, %s2896_s26  ;;  %v1278_v0 = vrot.slane %v1276_v24, 4  ;;  %v1292_v61 = vor.u32 %v1291_v15, %v1287_v27  ;;  %v1710_v24 = vshrl.u32 %v4325_v14, 16  ;;  %v1700_v15 = vshll.u32 %v4332_v22, 16 }
 0x1df   : > { %1669 = vst.msk [vmem:[#allocation2 + $0x14] sm:$0xf] %vm1663_vm13, %v1578_v21 }
 0x1e0   : > { %1877 = vrot.lane.b32.xlu0 %v4810_v7, %s2896_s26  ;;  %v1580_v47 = vpop.permute.xlu1 %1579  ;;  %v1282_v51 = vor.u32 %v1281_v54, %v1278_v0  ;;  %v1293_v11 = vrot.slane %v1292_v61, 4  ;;  %v1712_v54 = vrot.slane %v1710_v24, 4  ;;  %v1702_v61 = vrot.slane %v1700_v15, 5 }
 0x1e1   : > { %1670 = vst.msk [vmem:[#allocation2 + $0x18] sm:$0xf] %vm1663_vm13, %v1580_v47  ;;  %v1706_v47 = vshll.u32 %v4325_v14, 16 }
 0x1e2   : > { %v1610_v39 = vpop.permute.xlu0 %1609  ;;  %1911 = vrot.lane.b32.xlu1 %v3739_v8, %s2896_s26  ;;  %v1283_v56 = vrot.slane %v1282_v51, 4  ;;  %v4262_v3 = vsel %vm3068_vm4, %v1293_v11, %v1297_v18 }
 0x1e3   : > { %1685 = vst.msk [vmem:[#allocation2 + $0x54] sm:$0xf] %vm1663_vm13, %v1610_v39  ;;  %v1708_v0 = vrot.slane %v1706_v47, 5 }
 0x1e4   : > { %1909 = vrot.lane.b32.xlu0 %v3743_v52, %s2896_s26  ;;  %v1612_v35 = vpop.permute.xlu1 %1611  ;;  %v4266_v55 = vsel %vm3068_vm4, %v1283_v56, %v1287_v27  ;;  %v1697_v27 = vshrl.u32 %v4332_v22, 16 }
 0x1e5   : > { %1686 = vst.msk [vmem:[#allocation2 + $0x58] sm:$0xf] %vm1663_vm13, %v1612_v35 }
 0x1e6   : > { %v1582_v31 = vpop.permute.xlu0 %1581  ;;  %1325 = vrot.lane.b32.xlu1 %v4805_v60, %s2892_s11 }
 0x1e7   : > { %1671 = vst.msk [vmem:[#allocation2 + $0x1c] sm:$0xf] %vm1663_vm13, %v1582_v31  ;;  %v1699_v31 = vrot.slane %v1697_v27, 4 }
 0x1e8   : > { %1323 = vrot.lane.b32.xlu0 %v4806_v9, %s2892_s11  ;;  %v1729_v63 = vpop.permute.xlu1 %1728 }
 0x1e9   : > { %1821 = vst.msk [vmem:[#allocation2 + $0x10] sm:$0xf] %vm1816_vm14, %v1729_v63  ;;  %v269_v63 = vld [vmem:[%s3019_s7 + $0xd4] sm:$0x1]  ;;  %s202_s7 = sand.u32 1, %s2870_s16  }
 0x1ea   : > { %v1614_v2 = vpop.permute.xlu0 %1613  ;;  %1357 = vrot.lane.b32.xlu1 %v4807_v1, %s2892_s11  ;;  %v4818_v1 = vld [vmem:[#allocation13_spill] sm:$0xff]  ;;  %v1716_v11 = vshll.u32 %v269_v63, 16  ;;  %s2578_s6 = sshll.u32 %s202_s7, 8  ;;  %s4577_s18 = scalar_lea.sflag [#allocation4], %s202_s7 }
 0x1eb   : > { %1687 = vst.msk [vmem:[#allocation2 + $0x5c] sm:$0xf] %vm1663_vm13, %v1614_v2  ;;  %v1713_v2 = vor.u32 %v1712_v54, %v1708_v0  ;;  %s4461_s8 = scalar_lea.vmem [#allocation3], %s2578_s6 }
 0x1ec   : > { %1355 = vrot.lane.b32.xlu0 %v4808_v46, %s2892_s11  ;;  %v1761_v5 = vpop.permute.xlu1 %1760  ;;  %s2498_s14 = sshll.u32 %s4461_s8, 4  ;;  %s4572_s14 = int_to_ptr.vmem [resolvable:$true] %s2498_s14 }
 0x1ed   : > { %1837 = vst.msk [vmem:[#allocation2 + $0x50] sm:$0xf] %vm1816_vm14, %v1761_v5  ;;  %v1703_v5 = vor.u32 %v1702_v61, %v1699_v31  ;;  %p2817_p1 = scmp.lt.s32.totalorder %s4572_s14, %s2815_s5 }
 0x1ee   : > { %v1731_v6 = vpop.permute.xlu0 %1730  ;;  %1329 = vrot.lane.b32.xlu1 %v4811_v32, %s2892_s11 }
 0x1ef   : > { %1822 = vst.msk [vmem:[#allocation2 + $0x14] sm:$0xf] %vm1816_vm14, %v1731_v6  ;;  %v1714_v6 = vrot.slane %v1713_v2, 4 }
 0x1f0   : > { %1327 = vrot.lane.b32.xlu0 %v4812_v36, %s2892_s11  ;;  %v1733_v59 = vpop.permute.xlu1 %1732 }
 0x1f1   : > { %1823 = vst.msk [vmem:[#allocation2 + $0x18] sm:$0xf] %vm1816_vm14, %v1733_v59 }
 0x1f2   : > { %v1763_v34 = vpop.permute.xlu0 %1762  ;;  %1361 = vrot.lane.b32.xlu1 %v4262_v3, %s2892_s11 }
 0x1f3   : > { %1838 = vst.msk [vmem:[#allocation2 + $0x54] sm:$0xf] %vm1816_vm14, %v1763_v34  ;;  %v1704_v34 = vrot.slane %v1703_v5, 4 }
 0x1f4   : > { %1359 = vrot.lane.b32.xlu0 %v4266_v55, %s2892_s11  ;;  %v1765_v44 = vpop.permute.xlu1 %1764  ;;  %s2816_s11 = scalar_lea.vmem %s2815_s5, 8192 }
 0x1f5   : > { %1839 = vst.msk [vmem:[#allocation2 + $0x58] sm:$0xf] %vm1816_vm14, %v1765_v44  ;;  %v4821_v44 = vld [vmem:[#allocation34_spill] sm:$0xff] }
 0x1f6   : > { %v1735_v16 = vpop.permute.xlu0 %1734  ;;  %1462 = vrot.lane.b32.xlu1 %v4809_v29, %s2893_s12 }
 0x1f7   : > { %1824 = vst.msk [vmem:[#allocation2 + $0x1c] sm:$0xf] %vm1816_vm14, %v1735_v16 }
 0x1f8   : > { %1460 = vrot.lane.b32.xlu0 %v4810_v7, %s2893_s12  ;;  %v1866_v41 = vpop.permute.xlu1 %1865  ;;  %v4819_v7 = vld [vmem:[#allocation15_spill] sm:$0xff] }
 0x1f9   : > { %1958 = vst.msk [vmem:[#allocation2 + $0x10] sm:$0xf] %vm1953_vm15, %v1866_v41 }
 0x1fa   : > { %v1767_v50 = vpop.permute.xlu0 %1766  ;;  %1494 = vrot.lane.b32.xlu1 %v3739_v8, %s2893_s12 }
 0x1fb   : > { %1840 = vst.msk [vmem:[#allocation2 + $0x5c] sm:$0xf] %vm1816_vm14, %v1767_v50 }
 0x1fc   : > { %1492 = vrot.lane.b32.xlu0 %v3743_v52, %s2893_s12  ;;  %v1898_v43 = vpop.permute.xlu1 %1897 }
 0x1fd   : > { %1974 = vst.msk [vmem:[#allocation2 + $0x50] sm:$0xf] %vm1953_vm15, %v1898_v43  ;;  %v1855_v43 = vrot.slane %v269_v63, 5 }
 0x1fe   : > { %v1868_v20 = vpop.permute.xlu0 %1867  ;;  %1466 = vrot.lane.b32.xlu1 %v4814_v13, %s2893_s12 }
 0x1ff   : > { %1959 = vst.msk [vmem:[#allocation2 + $0x14] sm:$0xf] %vm1953_vm15, %v1868_v20 }
 0x200   : > { %1464 = vrot.lane.b32.xlu0 %v4815_v12, %s2893_s12  ;;  %v1870_v52 = vpop.permute.xlu1 %1869 }
 0x201   : > { %1960 = vst.msk [vmem:[#allocation2 + $0x18] sm:$0xf] %vm1953_vm15, %v1870_v52  ;;  %v1853_v52 = vsel %vm3487_vm7, %v2597_v38, %v1852_v58 }
 0x202   : > { %v1900_v57 = vpop.permute.xlu0 %1899  ;;  %1498 = vrot.lane.b32.xlu1 %v4296_v10, %s2893_s12 }
 0x203   : > { %1975 = vst.msk [vmem:[#allocation2 + $0x54] sm:$0xf] %vm1953_vm15, %v1900_v57 }
 0x204   : > { %1496 = vrot.lane.b32.xlu0 %v4300_v33, %s2893_s12  ;;  %v1902_v60 = vpop.permute.xlu1 %1901 }
 0x205   : > { %1976 = vst.msk [vmem:[#allocation2 + $0x58] sm:$0xf] %vm1953_vm15, %v1902_v60 }
 0x206   : > { %v1872_v9 = vpop.permute.xlu0 %1871  ;;  %v2796_v49 = vld [vmem:[#allocation2 + $0x10] sm:$0xff]   ;;  %1593 = vrot.lane.b32.xlu1 %v4817_v30, %s2894_s13 }
 0x207   : > { %1961 = vst.msk [vmem:[#allocation2 + $0x1c] sm:$0xf] %vm1953_vm15, %v1872_v9  ;;  %2674 = vmatprep.mubr.bf16.mxu0 %v2796_v49 }
 0x208   : > { %1591 = vrot.lane.b32.xlu0 %v4818_v1, %s2894_s13  ;;  %v1318_v46 = vpop.permute.xlu1 %1317 }
 0x209   : > { %1405 = vst.msk [vmem:[#allocation2 + $0x24] sm:$0xf] %vm1395_vm11, %v1318_v46 }
 0x20a   : > { %v1904_v48 = vpop.permute.xlu0 %1903  ;;  %v2797_v23 = vld [vmem:[#allocation2 + $0x50] sm:$0xff]   ;;  %1625 = vrot.lane.b32.xlu1 %v2808_v19, %s2894_s13 }
 0x20b   : > { %1977 = vst.msk [vmem:[#allocation2 + $0x5c] sm:$0xf] %vm1953_vm15, %v1904_v48  ;;  %2690 = vmatprep.mubr.bf16.mxu1 %v2797_v23 }
 0x20c   : > { %1623 = vrot.lane.b32.xlu0 %v2809_v62, %s2894_s13  ;;  %v1350_v45 = vpop.permute.xlu1 %1349 }
 0x20d   : > { %1421 = vst.msk [vmem:[#allocation2 + $0x64] sm:$0xf] %vm1395_vm11, %v1350_v45 }
 0x20e   : > { %v1348_v21 = vpop.permute.xlu0 %1347  ;;  %v2798_v29 = vld [vmem:[#allocation2 + $0x18] sm:$0xff]   ;;  %1597 = vrot.lane.b32.xlu1 %v4819_v7, %s2894_s13 }
 0x20f   : > { %1420 = vst.msk [vmem:[#allocation2 + $0x60] sm:$0xf] %vm1395_vm11, %v1348_v21  ;;  %2675 = vmatmul.mubr.bf16.gmra.mxu0 %v2798_v29 }
 0x210   : > { %1595 = vrot.lane.b32.xlu0 %v4820_v17, %s2894_s13  ;;  %v1322_v39 = vpop.permute.xlu1 %1321 }
 0x211   : > { %1407 = vst.msk [vmem:[#allocation2 + $0x2c] sm:$0xf] %vm1395_vm11, %v1322_v39 }
 0x212   : > { %v1320_v35 = vpop.permute.xlu0 %1319  ;;  %v2799_v53 = vld [vmem:[#allocation2 + $0x58] sm:$0xff]   ;;  %1629 = vrot.lane.b32.xlu1 %v4325_v14, %s2894_s13 }
 0x213   : > { %1406 = vst.msk [vmem:[#allocation2 + $0x28] sm:$0xf] %vm1395_vm11, %v1320_v35  ;;  %2691 = vmatmul.mubr.bf16.gmra.mxu1 %v2799_v53 }
 0x214   : > { %1627 = vrot.lane.b32.xlu0 %v4332_v22, %s2894_s13  ;;  %v1354_v25 = vpop.permute.xlu1 %1353 }
 0x215   : > { %1423 = vst.msk [vmem:[#allocation2 + $0x6c] sm:$0xf] %vm1395_vm11, %v1354_v25 }
 0x216   : > { %v1352_v51 = vpop.permute.xlu0 %1351  ;;  %1746 = vrot.lane.b32.xlu1 %v4811_v32, %s2895_s30  ;;  %v1718_v32 = vrot.slane %v1716_v11, 5 }
 0x217   : > { %1422 = vst.msk [vmem:[#allocation2 + $0x68] sm:$0xf] %vm1395_vm11, %v1352_v51 }
 0x218   : > { %1744 = vrot.lane.b32.xlu0 %v4812_v36, %s2895_s30  ;;  %v1455_v18 = vpop.permute.xlu1 %1454 }
 0x219   : > { %1542 = vst.msk [vmem:[#allocation2 + $0x24] sm:$0xf] %vm1532_vm12, %v1455_v18 }
 0x21a   : > { %v1453_v56 = vpop.permute.xlu0 %1452  ;;  %1778 = vrot.lane.b32.xlu1 %v4262_v3, %s2895_s30  ;;  %v1719_v3 = vsel %vm3068_vm4, %v1714_v6, %v1718_v32 }
 0x21b   : > { %1541 = vst.msk [vmem:[#allocation2 + $0x20] sm:$0xf] %vm1532_vm12, %v1453_v56 }
 0x21c   : > { %1776 = vrot.lane.b32.xlu0 %v4266_v55, %s2895_s30  ;;  %v1487_v59 = vpop.permute.xlu1 %1486  ;;  %v1709_v55 = vsel %vm3068_vm4, %v1704_v34, %v1708_v0 }
 0x21d   : > { %1558 = vst.msk [vmem:[#allocation2 + $0x64] sm:$0xf] %vm1532_vm12, %v1487_v59 }
 0x21e   : > { %v1485_v36 = vpop.permute.xlu0 %1484  ;;  %1750 = vrot.lane.b32.xlu1 %v4790_v42, %s2895_s30 }
 0x21f   : > { %1557 = vst.msk [vmem:[#allocation2 + $0x60] sm:$0xf] %vm1532_vm12, %v1485_v36 }
 0x220   : > { %1748 = vrot.lane.b32.xlu0 %v4821_v44, %s2895_s30  ;;  %v1459_v16 = vpop.permute.xlu1 %1458 }
 0x221   : > { %1544 = vst.msk [vmem:[#allocation2 + $0x2c] sm:$0xf] %vm1532_vm12, %v1459_v16 }
 0x222   : > { %v1457_v28 = vpop.permute.xlu0 %1456  ;;  %1782 = vrot.lane.b32.xlu1 %v1719_v3, %s2895_s30  ;;  %v4442_v3 = vld [vmem:[%s4625_s2] ss:$0 sm:$0xff] }
 0x223   : > { %1543 = vst.msk [vmem:[#allocation2 + $0x28] sm:$0xf] %vm1532_vm12, %v1457_v28 }
 0x224   : > { %1780 = vrot.lane.b32.xlu0 %v1709_v55, %s2895_s30  ;;  %v1491_v42 = vpop.permute.xlu1 %1490  ;;  %v4448_v55 = vld [vmem:[%s4626_s3] ss:$0 sm:$0xff] }
 0x225   : > { %1560 = vst.msk [vmem:[#allocation2 + $0x6c] sm:$0xf] %vm1532_vm12, %v1491_v42 }
 0x226   : > { %v1489_v41 = vpop.permute.xlu0 %1488  ;;  %1883 = vrot.lane.b32.xlu1 %v4814_v13, %s2896_s26 }
 0x227   : > { %1559 = vst.msk [vmem:[#allocation2 + $0x68] sm:$0xf] %vm1532_vm12, %v1489_v41 }
 0x228   : > { %1881 = vrot.lane.b32.xlu0 %v4815_v12, %s2896_s26  ;;  %v1586_v50 = vpop.permute.xlu1 %1585  ;;  %v1856_v12 = vsel %vm3487_vm7, %v1854_v37, %v1855_v43 }
 0x229   : > { %1673 = vst.msk [vmem:[#allocation2 + $0x24] sm:$0xf] %vm1663_vm13, %v1586_v50 }
 0x22a   : > { %v1584_v26 = vpop.permute.xlu0 %1583  ;;  %1915 = vrot.lane.b32.xlu1 %v4296_v10, %s2896_s26 }
 0x22b   : > { %1672 = vst.msk [vmem:[#allocation2 + $0x20] sm:$0xf] %vm1663_vm13, %v1584_v26 }
 0x22c   : > { %1913 = vrot.lane.b32.xlu0 %v4300_v33, %s2896_s26  ;;  %v1618_v20 = vpop.permute.xlu1 %1617 }
 0x22d   : > { %1689 = vst.msk [vmem:[#allocation2 + $0x64] sm:$0xf] %vm1663_vm13, %v1618_v20 }
 0x22e   : > { %v1616_v13 = vpop.permute.xlu0 %1615  ;;  %1887 = vrot.lane.b32.xlu1 %v3646_v4, %s2896_s26 }
 0x22f   : > { %1688 = vst.msk [vmem:[#allocation2 + $0x60] sm:$0xf] %vm1663_vm13, %v1616_v13 }
 0x230   : > { %1885 = vrot.lane.b32.xlu0 %v3652_v40, %s2896_s26  ;;  %v1590_v10 = vpop.permute.xlu1 %1589 }
 0x231   : > { %1675 = vst.msk [vmem:[#allocation2 + $0x2c] sm:$0xf] %vm1663_vm13, %v1590_v10 }
 0x232   : > { %v1588_v33 = vpop.permute.xlu0 %1587  ;;  %1919 = vrot.lane.b32.xlu1 %v1856_v12, %s2896_s26 }
 0x233   : > { %1674 = vst.msk [vmem:[#allocation2 + $0x28] sm:$0xf] %vm1663_vm13, %v1588_v33 }
 0x234   : > { %1917 = vrot.lane.b32.xlu0 %v1853_v52, %s2896_s26  ;;  %v1622_v4 = vpop.permute.xlu1 %1621  ;;  %s2810_s26 = scalar_lea.vmem %s4572_s14, 4096 }
 0x235   : > { %1691 = vst.msk [vmem:[#allocation2 + $0x6c] sm:$0xf] %vm1663_vm13, %v1622_v4  ;;  %p2811_p12 = scmp.ne.s32.totalorder %s4572_s14, %s2810_s26  ;;  %p2818_p2 = scmp.lt.s32.totalorder %s2816_s11, %s2810_s26 }
 0x236   : > { %v1620_v40 = vpop.permute.xlu0 %1619 }
 0x237   : > { %1690 = vst.msk [vmem:[#allocation2 + $0x68] sm:$0xf] %vm1663_vm13, %v1620_v40  ;;  %p2812_p13 = pnand %p2811_p12, %p2964_p4  ;;  %p2819_p3 = por %p2818_p2, %p2817_p1 }
 0x238   : > { %v1739_v57 = vpop.permute.xlu1 %1738 }
 0x239   : > { %1826 = vst.msk [vmem:[#allocation2 + $0x24] sm:$0xf] %vm1816_vm14, %v1739_v57  ;;  %p2813_p0 = pneg %p2812_p13 }
 0x23a   : > { %v1737_v8 = vpop.permute.xlu0 %1736 }
 0x23b   : > { %1825 = vst.msk [vmem:[#allocation2 + $0x20] sm:$0xf] %vm1816_vm14, %v1737_v8  ;;  %p2820_p5 = pnand %p2819_p3, %p2813_p0 }
 0x23c   : > { %v1771_v60 = vpop.permute.xlu1 %1770 }
 0x23d   : > { %1842 = vst.msk [vmem:[#allocation2 + $0x64] sm:$0xf] %vm1816_vm14, %v1771_v60 }
 0x23e   : > { %v1769_v9 = vpop.permute.xlu0 %1768 }
 0x23f   : > { %1841 = vst.msk [vmem:[#allocation2 + $0x60] sm:$0xf] %vm1816_vm14, %v1769_v9 }
 0x240   : > { %v1743_v49 = vpop.permute.xlu1 %1742 }
 0x241   : > { %1828 = vst.msk [vmem:[#allocation2 + $0x2c] sm:$0xf] %vm1816_vm14, %v1743_v49 }
 0x242   : > { %v1741_v30 = vpop.permute.xlu0 %1740 }
 0x243   : > { %1827 = vst.msk [vmem:[#allocation2 + $0x28] sm:$0xf] %vm1816_vm14, %v1741_v30 }
 0x244   : > { %v1775_v1 = vpop.permute.xlu1 %1774 }
 0x245   : > { %1844 = vst.msk [vmem:[#allocation2 + $0x6c] sm:$0xf] %vm1816_vm14, %v1775_v1 }
 0x246   : > { %v1773_v46 = vpop.permute.xlu0 %1772 }
 0x247   : > { %1843 = vst.msk [vmem:[#allocation2 + $0x68] sm:$0xf] %vm1816_vm14, %v1773_v46 }
 0x248   : > { %v1876_v48 = vpop.permute.xlu1 %1875 }
 0x249   : > { %1963 = vst.msk [vmem:[#allocation2 + $0x24] sm:$0xf] %vm1953_vm15, %v1876_v48 }
 0x24a   : > { %v1874_v23 = vpop.permute.xlu0 %1873 }
 0x24b   : > { %1962 = vst.msk [vmem:[#allocation2 + $0x20] sm:$0xf] %vm1953_vm15, %v1874_v23 }
 0x24c   : > { %v1908_v19 = vpop.permute.xlu1 %1907 }
 0x24d   : > { %1979 = vst.msk [vmem:[#allocation2 + $0x64] sm:$0xf] %vm1953_vm15, %v1908_v19 }
 0x24e   : > { %v1906_v62 = vpop.permute.xlu0 %1905 }
 0x24f   : > { %1978 = vst.msk [vmem:[#allocation2 + $0x60] sm:$0xf] %vm1953_vm15, %v1906_v62 }
 0x250   : > { %v1880_v45 = vpop.permute.xlu1 %1879 }
 0x251   : > { %1965 = vst.msk [vmem:[#allocation2 + $0x2c] sm:$0xf] %vm1953_vm15, %v1880_v45 }
 0x252   : > { %v1878_v21 = vpop.permute.xlu0 %1877  ;;  %v2800_v29 = vld [vmem:[#allocation2 + $0x20] sm:$0xff]  }
 0x253   : > { %1964 = vst.msk [vmem:[#allocation2 + $0x28] sm:$0xf] %vm1953_vm15, %v1878_v21  ;;  %2678 = vmatprep.mubr.bf16.mxu0 %v2800_v29 }
 0x254   : > { %v1912_v7 = vpop.permute.xlu1 %1911 }
 0x255   : > { %1981 = vst.msk [vmem:[#allocation2 + $0x6c] sm:$0xf] %vm1953_vm15, %v1912_v7 }
 0x256   : > { %v1910_v14 = vpop.permute.xlu0 %1909  ;;  %v2801_v17 = vld [vmem:[#allocation2 + $0x60] sm:$0xff]  }
 0x257   : > { %1980 = vst.msk [vmem:[#allocation2 + $0x68] sm:$0xf] %vm1953_vm15, %v1910_v14  ;;  %2694 = vmatprep.mubr.bf16.mxu1 %v2801_v17 }
 0x258   : > { %v1326_v47 = vpop.permute.xlu1 %1325 }
 0x259   : > { %1409 = vst.msk [vmem:[#allocation2 + $0x34] sm:$0xf] %vm1395_vm11, %v1326_v47 }
 0x25a   : > { %v1324_v24 = vpop.permute.xlu0 %1323  ;;  %v2802_v22 = vld [vmem:[#allocation2 + $0x28] sm:$0xff]  }
 0x25b   : > { %1408 = vst.msk [vmem:[#allocation2 + $0x30] sm:$0xf] %vm1395_vm11, %v1324_v24  ;;  %2679 = vmatmul.mubr.bf16.gmra.mxu0 %v2802_v22 }
 0x25c   : > { %v1358_v39 = vpop.permute.xlu1 %1357 }
 0x25d   : > { %1425 = vst.msk [vmem:[#allocation2 + $0x74] sm:$0xf] %vm1395_vm11, %v1358_v39 }
 0x25e   : > { %v1356_v27 = vpop.permute.xlu0 %1355  ;;  %v2803_v15 = vld [vmem:[#allocation2 + $0x68] sm:$0xff]  }
 0x25f   : > { %1424 = vst.msk [vmem:[#allocation2 + $0x70] sm:$0xf] %vm1395_vm11, %v1356_v27  ;;  %2695 = vmatmul.mubr.bf16.gmra.mxu1 %v2803_v15 }
 0x260   : > { %v1330_v35 = vpop.permute.xlu1 %1329 }
 0x261   : > { %1411 = vst.msk [vmem:[#allocation2 + $0x3c] sm:$0xf] %vm1395_vm11, %v1330_v35 }
 0x262   : > { %v1328_v53 = vpop.permute.xlu0 %1327 }
 0x263   : > { %1410 = vst.msk [vmem:[#allocation2 + $0x38] sm:$0xf] %vm1395_vm11, %v1328_v53 }
 0x264   : > { %v1362_v0 = vpop.permute.xlu1 %1361 }
 0x265   : > { %1427 = vst.msk [vmem:[#allocation2 + $0x7c] sm:$0xf] %vm1395_vm11, %v1362_v0 }
 0x266   : > { %v1360_v54 = vpop.permute.xlu0 %1359 }
 0x267   : > { %1426 = vst.msk [vmem:[#allocation2 + $0x78] sm:$0xf] %vm1395_vm11, %v1360_v54 }
 0x268   : > { %v1463_v31 = vpop.permute.xlu1 %1462 }
 0x269   : > { %1546 = vst.msk [vmem:[#allocation2 + $0x34] sm:$0xf] %vm1532_vm12, %v1463_v31 }
 0x26a   : > { %v1461_v61 = vpop.permute.xlu0 %1460 }
 0x26b   : > { %1545 = vst.msk [vmem:[#allocation2 + $0x30] sm:$0xf] %vm1532_vm12, %v1461_v61 }
 0x26c   : > { %v1495_v25 = vpop.permute.xlu1 %1494 }
 0x26d   : > { %1562 = vst.msk [vmem:[#allocation2 + $0x74] sm:$0xf] %vm1532_vm12, %v1495_v25 }
 0x26e   : > { %v1493_v63 = vpop.permute.xlu0 %1492 }
 0x26f   : > { %1561 = vst.msk [vmem:[#allocation2 + $0x70] sm:$0xf] %vm1532_vm12, %v1493_v63 }
 0x270   : > { %v1467_v51 = vpop.permute.xlu1 %1466 }
 0x271   : > { %1548 = vst.msk [vmem:[#allocation2 + $0x3c] sm:$0xf] %vm1532_vm12, %v1467_v51 }
 0x272   : > { %v1465_v2 = vpop.permute.xlu0 %1464 }
 0x273   : > { %1547 = vst.msk [vmem:[#allocation2 + $0x38] sm:$0xf] %vm1532_vm12, %v1465_v2 }
 0x274   : > { %v1499_v11 = vpop.permute.xlu1 %1498 }
 0x275   : > { %1564 = vst.msk [vmem:[#allocation2 + $0x7c] sm:$0xf] %vm1532_vm12, %v1499_v11 }
 0x276   : > { %v1497_v18 = vpop.permute.xlu0 %1496 }
 0x277   : > { %1563 = vst.msk [vmem:[#allocation2 + $0x78] sm:$0xf] %vm1532_vm12, %v1497_v18 }
 0x278   : > { %v1594_v5 = vpop.permute.xlu1 %1593 }
 0x279   : > { %1677 = vst.msk [vmem:[#allocation2 + $0x34] sm:$0xf] %vm1663_vm13, %v1594_v5 }
 0x27a   : > { %v1592_v56 = vpop.permute.xlu0 %1591 }
 0x27b   : > { %1676 = vst.msk [vmem:[#allocation2 + $0x30] sm:$0xf] %vm1663_vm13, %v1592_v56 }
 0x27c   : > { %v1626_v6 = vpop.permute.xlu1 %1625 }
 0x27d   : > { %1693 = vst.msk [vmem:[#allocation2 + $0x74] sm:$0xf] %vm1663_vm13, %v1626_v6 }
 0x27e   : > { %v1624_v32 = vpop.permute.xlu0 %1623 }
 0x27f   : > { %1692 = vst.msk [vmem:[#allocation2 + $0x70] sm:$0xf] %vm1663_vm13, %v1624_v32 }
 0x280   : > { %v1598_v59 = vpop.permute.xlu1 %1597 }
 0x281   : > { %1679 = vst.msk [vmem:[#allocation2 + $0x3c] sm:$0xf] %vm1663_vm13, %v1598_v59 }
 0x282   : > { %v1596_v34 = vpop.permute.xlu0 %1595 }
 0x283   : > { %1678 = vst.msk [vmem:[#allocation2 + $0x38] sm:$0xf] %vm1663_vm13, %v1596_v34 }
 0x284   : > { %v1630_v36 = vpop.permute.xlu1 %1629 }
 0x285   : > { %1695 = vst.msk [vmem:[#allocation2 + $0x7c] sm:$0xf] %vm1663_vm13, %v1630_v36 }
 0x286   : > { %v1628_v44 = vpop.permute.xlu0 %1627 }
 0x287   : > { %1694 = vst.msk [vmem:[#allocation2 + $0x78] sm:$0xf] %vm1663_vm13, %v1628_v44  ;;  %v2672_v16 = vpop.f32.mrf.mxu0 }
 0x288   : > { %v2348_v28 = vmul.f32 %v2672_v16, %v4442_v3  ;;  %v1747_v42 = vpop.permute.xlu1 %1746 }
 0x289   : > { %1830 = vst.msk [vmem:[#allocation2 + $0x34] sm:$0xf] %vm1816_vm14, %v1747_v42  ;;  %v2212_v58 = vpop.f32.mrf.mxu0 }
 0x28a   : > { %v1745_v41 = vpop.permute.xlu0 %1744  ;;  %v2387_v50 = vadd.f32 %v4448_v55, %v2348_v28  ;;  %v2346_v26 = vmul.f32 %v4442_v3, %v2212_v58 }
 0x28b   : > { %1829 = vst.msk [vmem:[#allocation2 + $0x30] sm:$0xf] %vm1816_vm14, %v1745_v41  ;;  %v2673_v37 = vpop.f32.mrf.mxu0  ;;  %v2688_v43 = vpop.f32.mrf.mxu1 }
 0x28c   : > { %v2419_v38 = vmax.f32 %v2387_v50, 0.0  ;;  %v2385_v20 = vadd.f32 %v4448_v55, %v2346_v26  ;;  %v2349_v13 = vmul.f32 %v2673_v37, %v4442_v3  ;;  %v2364_v12 = vmul.f32 %v2688_v43, %v4442_v3  ;;  %v1779_v10 = vpop.permute.xlu1 %1778 }
 0x28d   : > { %1846 = vst.msk [vmem:[#allocation2 + $0x74] sm:$0xf] %vm1816_vm14, %v1779_v10  ;;  %v2215_v33 = vpop.f32.mrf.mxu0  ;;  %v2276_v60 = vpop.f32.mrf.mxu1 }
 0x28e   : > { %v1777_v52 = vpop.permute.xlu0 %1776  ;;  %2451 = vst [vmem:[%s4461_s8 + $0x10] sm:$0xff] %v2419_v38  ;;  %v2417_v4 = vmax.f32 %v2385_v20, 0.0  ;;  %v2388_v40 = vadd.f32 %v4448_v55, %v2349_v13  ;;  %v2403_v57 = vadd.f32 %v4448_v55, %v2364_v12  ;;  %v2347_v8 = vmul.f32 %v4442_v3, %v2215_v33 }
 0x28f   : > { %1845 = vst.msk [vmem:[#allocation2 + $0x70] sm:$0xf] %vm1816_vm14, %v1777_v52  ;;  %v2362_v9 = vmul.f32 %v4442_v3, %v2276_v60  ;;  %v2689_v46 = vpop.f32.mrf.mxu1 }
 0x290   : > { %2449 = vst [vmem:[%s4461_s8] sm:$0xff] %v2417_v4  ;;  %v2420_v49 = vmax.f32 %v2388_v40, 0.0  ;;  %v2435_v30 = vmax.f32 %v2403_v57, 0.0  ;;  %v2386_v1 = vadd.f32 %v4448_v55, %v2347_v8  ;;  %v1751_v48 = vpop.permute.xlu1 %1750  ;;  %v2365_v19 = vmul.f32 %v2689_v46, %v4442_v3 }
 0x291   : > { %v2401_v23 = vadd.f32 %v4448_v55, %v2362_v9  ;;  %1832 = vst.msk [vmem:[#allocation2 + $0x3c] sm:$0xf] %vm1816_vm14, %v1751_v48  ;;  %v2279_v21 = vpop.f32.mrf.mxu1 }
 0x292   : > { %v1749_v62 = vpop.permute.xlu0 %1748  ;;  %2452 = vst [vmem:[%s4461_s8 + $0x18] sm:$0xff] %v2420_v49  ;;  %2467 = vst [vmem:[%s4461_s8 + $0x90] sm:$0xff] %v2435_v30  ;;  %v2418_v45 = vmax.f32 %v2386_v1, 0.0  ;;  %v2404_v7 = vadd.f32 %v4448_v55, %v2365_v19  ;;  %v2363_v14 = vmul.f32 %v4442_v3, %v2279_v21 }
 0x293   : > { %1831 = vst.msk [vmem:[#allocation2 + $0x38] sm:$0xf] %vm1816_vm14, %v1749_v62  ;;  %v2433_v29 = vmax.f32 %v2401_v23, 0.0 }
 0x294   : > { %2450 = vst [vmem:[%s4461_s8 + $0x8] sm:$0xff] %v2418_v45  ;;  %v1783_v17 = vpop.permute.xlu1 %1782  ;;  %v2436_v47 = vmax.f32 %v2404_v7, 0.0  ;;  %v2402_v24 = vadd.f32 %v4448_v55, %v2363_v14 }
 0x295   : > { %2465 = vst [vmem:[%s4461_s8 + $0x80] sm:$0xff] %v2433_v29  ;;  %1848 = vst.msk [vmem:[#allocation2 + $0x7c] sm:$0xf] %vm1816_vm14, %v1783_v17 }
 0x296   : > { %v1781_v22 = vpop.permute.xlu0 %1780  ;;  %2468 = vst [vmem:[%s4461_s8 + $0x98] sm:$0xff] %v2436_v47  ;;  %v2434_v39 = vmax.f32 %v2402_v24, 0.0 }
 0x297   : > { %1847 = vst.msk [vmem:[#allocation2 + $0x78] sm:$0xf] %vm1816_vm14, %v1781_v22 }
 0x298   : > { %v1884_v27 = vpop.permute.xlu1 %1883  ;;  %2466 = vst [vmem:[%s4461_s8 + $0x88] sm:$0xff] %v2434_v39 }
 0x299   : > { %1967 = vst.msk [vmem:[#allocation2 + $0x34] sm:$0xf] %vm1953_vm15, %v1884_v27 }
 0x29a   : > { %v1882_v15 = vpop.permute.xlu0 %1881 }
 0x29b   : > { %1966 = vst.msk [vmem:[#allocation2 + $0x30] sm:$0xf] %vm1953_vm15, %v1882_v15 }
 0x29c   : > { %v1916_v35 = vpop.permute.xlu1 %1915 }
 0x29d   : > { %1983 = vst.msk [vmem:[#allocation2 + $0x74] sm:$0xf] %vm1953_vm15, %v1916_v35 }
 0x29e   : > { %v1914_v53 = vpop.permute.xlu0 %1913 }
 0x29f   : > { %1982 = vst.msk [vmem:[#allocation2 + $0x70] sm:$0xf] %vm1953_vm15, %v1914_v53 }
 0x2a0   : > { %v1888_v0 = vpop.permute.xlu1 %1887 }
 0x2a1   : > { %1969 = vst.msk [vmem:[#allocation2 + $0x3c] sm:$0xf] %vm1953_vm15, %v1888_v0 }
 0x2a2   : > { %v1886_v54 = vpop.permute.xlu0 %1885  ;;  %v2804_v31 = vld [vmem:[#allocation2 + $0x30] sm:$0xff]  }
 0x2a3   : > { %1968 = vst.msk [vmem:[#allocation2 + $0x38] sm:$0xf] %vm1953_vm15, %v1886_v54  ;;  %2682 = vmatprep.mubr.bf16.mxu0 %v2804_v31 }
 0x2a4   : > { %v1920_v61 = vpop.permute.xlu1 %1919 }
 0x2a5   : > { %1985 = vst.msk [vmem:[#allocation2 + $0x7c] sm:$0xf] %vm1953_vm15, %v1920_v61 }
 0x2a6   : > { %v1918_v25 = vpop.permute.xlu0 %1917  ;;  %v2805_v63 = vld [vmem:[#allocation2 + $0x70] sm:$0xff]  }
 0x2a7   : > { %1984 = vst.msk [vmem:[#allocation2 + $0x78] sm:$0xf] %vm1953_vm15, %v1918_v25  ;;  %2698 = vmatprep.mubr.bf16.mxu1 %v2805_v63 }
 0x2aa   : > { %v2806_v51 = vld [vmem:[#allocation2 + $0x38] sm:$0xff]  }
 0x2ab   : > { %2683 = vmatmul.mubr.bf16.gmra.mxu0 %v2806_v51 }
 0x2ae   : > { %v2807_v2 = vld [vmem:[#allocation2 + $0x78] sm:$0xff]  }
 0x2af   : > { %2699 = vmatmul.mubr.bf16.gmra.mxu1 %v2807_v2 }
 0x2cf   : > { %v2676_v11 = vpop.f32.mrf.mxu0 }
 0x2d0   : > { %v2352_v18 = vmul.f32 %v2676_v11, %v4442_v3 }
 0x2d1   : > { %v2228_v5 = vpop.f32.mrf.mxu0 }
 0x2d2   : > { %v2391_v56 = vadd.f32 %v4448_v55, %v2352_v18  ;;  %v2350_v6 = vmul.f32 %v4442_v3, %v2228_v5 }
 0x2d3   : > { %v2677_v32 = vpop.f32.mrf.mxu0  ;;  %v2692_v59 = vpop.f32.mrf.mxu1 }
 0x2d4   : > { %v2423_v34 = vmax.f32 %v2391_v56, 0.0  ;;  %v2389_v36 = vadd.f32 %v4448_v55, %v2350_v6  ;;  %v2353_v44 = vmul.f32 %v2677_v32, %v4442_v3  ;;  %v2368_v16 = vmul.f32 %v2692_v59, %v4442_v3 }
 0x2d5   : > { %v2231_v28 = vpop.f32.mrf.mxu0  ;;  %v2292_v42 = vpop.f32.mrf.mxu1 }
 0x2d6   : > { %2455 = vst [vmem:[%s4461_s8 + $0x30] sm:$0xff] %v2423_v34  ;;  %v2421_v41 = vmax.f32 %v2389_v36, 0.0  ;;  %v2392_v58 = vadd.f32 %v4448_v55, %v2353_v44  ;;  %v2407_v50 = vadd.f32 %v4448_v55, %v2368_v16  ;;  %v2351_v26 = vmul.f32 %v4442_v3, %v2231_v28 }
 0x2d7   : > { %v2366_v37 = vmul.f32 %v4442_v3, %v2292_v42  ;;  %v2693_v43 = vpop.f32.mrf.mxu1 }
 0x2d8   : > { %2453 = vst [vmem:[%s4461_s8 + $0x20] sm:$0xff] %v2421_v41  ;;  %v2424_v38 = vmax.f32 %v2392_v58, 0.0  ;;  %v2439_v20 = vmax.f32 %v2407_v50, 0.0  ;;  %v2390_v13 = vadd.f32 %v4448_v55, %v2351_v26  ;;  %v2369_v12 = vmul.f32 %v2693_v43, %v4442_v3 }
 0x2d9   : > { %v2405_v10 = vadd.f32 %v4448_v55, %v2366_v37  ;;  %v2295_v52 = vpop.f32.mrf.mxu1 }
 0x2da   : > { %2456 = vst [vmem:[%s4461_s8 + $0x38] sm:$0xff] %v2424_v38  ;;  %2471 = vst [vmem:[%s4461_s8 + $0xb0] sm:$0xff] %v2439_v20  ;;  %v2422_v33 = vmax.f32 %v2390_v13, 0.0  ;;  %v2408_v4 = vadd.f32 %v4448_v55, %v2369_v12  ;;  %v2367_v40 = vmul.f32 %v4442_v3, %v2295_v52 }
 0x2db   : > { %v2437_v57 = vmax.f32 %v2405_v10, 0.0 }
 0x2dc   : > { %2454 = vst [vmem:[%s4461_s8 + $0x28] sm:$0xff] %v2422_v33  ;;  %v2440_v8 = vmax.f32 %v2408_v4, 0.0  ;;  %v2406_v60 = vadd.f32 %v4448_v55, %v2367_v40 }
 0x2dd   : > { %2469 = vst [vmem:[%s4461_s8 + $0xa0] sm:$0xff] %v2437_v57 }
 0x2de   : > { %2472 = vst [vmem:[%s4461_s8 + $0xb8] sm:$0xff] %v2440_v8  ;;  %v2438_v9 = vmax.f32 %v2406_v60, 0.0 }
 0x2e0   : > { %2470 = vst [vmem:[%s4461_s8 + $0xa8] sm:$0xff] %v2438_v9 }
 0x31b   : > { %v2680_v49 = vpop.f32.mrf.mxu0 }
 0x31c   : > { %v2356_v30 = vmul.f32 %v2680_v49, %v4442_v3 }
 0x31d   : > { %v2244_v1 = vpop.f32.mrf.mxu0 }
 0x31e   : > { %v2395_v46 = vadd.f32 %v4448_v55, %v2356_v30  ;;  %v2354_v48 = vmul.f32 %v4442_v3, %v2244_v1 }
 0x31f   : > { %v2681_v23 = vpop.f32.mrf.mxu0  ;;  %v2696_v19 = vpop.f32.mrf.mxu1 }
 0x320   : > { %v2427_v62 = vmax.f32 %v2395_v46, 0.0  ;;  %v2393_v45 = vadd.f32 %v4448_v55, %v2354_v48  ;;  %v2357_v21 = vmul.f32 %v2681_v23, %v4442_v3  ;;  %v2372_v29 = vmul.f32 %v2696_v19, %v4442_v3 }
 0x321   : > { %v2247_v7 = vpop.f32.mrf.mxu0  ;;  %v2308_v14 = vpop.f32.mrf.mxu1 }
 0x322   : > { %2459 = vst [vmem:[%s4461_s8 + $0x50] sm:$0xff] %v2427_v62  ;;  %v2425_v17 = vmax.f32 %v2393_v45, 0.0  ;;  %v2396_v47 = vadd.f32 %v4448_v55, %v2357_v21  ;;  %v2411_v24 = vadd.f32 %v4448_v55, %v2372_v29  ;;  %v2355_v22 = vmul.f32 %v4442_v3, %v2247_v7 }
 0x323   : > { %v2370_v39 = vmul.f32 %v4442_v3, %v2308_v14  ;;  %v2697_v27 = vpop.f32.mrf.mxu1 }
 0x324   : > { %2457 = vst [vmem:[%s4461_s8 + $0x40] sm:$0xff] %v2425_v17  ;;  %v2428_v15 = vmax.f32 %v2396_v47, 0.0  ;;  %v2443_v35 = vmax.f32 %v2411_v24, 0.0  ;;  %v2394_v53 = vadd.f32 %v4448_v55, %v2355_v22  ;;  %v2373_v0 = vmul.f32 %v2697_v27, %v4442_v3 }
 0x325   : > { %v2409_v54 = vadd.f32 %v4448_v55, %v2370_v39  ;;  %v2311_v31 = vpop.f32.mrf.mxu1 }
 0x326   : > { %2460 = vst [vmem:[%s4461_s8 + $0x58] sm:$0xff] %v2428_v15  ;;  %2475 = vst [vmem:[%s4461_s8 + $0xd0] sm:$0xff] %v2443_v35  ;;  %v2426_v61 = vmax.f32 %v2394_v53, 0.0  ;;  %v2412_v25 = vadd.f32 %v4448_v55, %v2373_v0  ;;  %v2371_v63 = vmul.f32 %v4442_v3, %v2311_v31 }
 0x327   : > { %v2441_v51 = vmax.f32 %v2409_v54, 0.0 }
 0x328   : > { %2458 = vst [vmem:[%s4461_s8 + $0x48] sm:$0xff] %v2426_v61  ;;  %v2444_v2 = vmax.f32 %v2412_v25, 0.0  ;;  %v2410_v11 = vadd.f32 %v4448_v55, %v2371_v63 }
 0x329   : > { %2473 = vst [vmem:[%s4461_s8 + $0xc0] sm:$0xff] %v2441_v51 }
 0x32a   : > { %2476 = vst [vmem:[%s4461_s8 + $0xd8] sm:$0xff] %v2444_v2  ;;  %v2442_v18 = vmax.f32 %v2410_v11, 0.0 }
 0x32c   : > { %2474 = vst [vmem:[%s4461_s8 + $0xc8] sm:$0xff] %v2442_v18 }
 0x36b   : > { %v2684_v5 = vpop.f32.mrf.mxu0 }
 0x36c   : > { %v2360_v56 = vmul.f32 %v2684_v5, %v4442_v3 }
 0x36d   : > { %v2260_v6 = vpop.f32.mrf.mxu0 }
 0x36e   : > { %v2399_v32 = vadd.f32 %v4448_v55, %v2360_v56  ;;  %v2358_v59 = vmul.f32 %v4442_v3, %v2260_v6 }
 0x36f   : > { %v2685_v34 = vpop.f32.mrf.mxu0  ;;  %v2700_v36 = vpop.f32.mrf.mxu1 }
 0x370   : > { %v2431_v44 = vmax.f32 %v2399_v32, 0.0  ;;  %v2397_v16 = vadd.f32 %v4448_v55, %v2358_v59  ;;  %v2361_v28 = vmul.f32 %v2685_v34, %v4442_v3  ;;  %v2376_v42 = vmul.f32 %v2700_v36, %v4442_v3 }
 0x371   : > { %v2263_v41 = vpop.f32.mrf.mxu0  ;;  %v2324_v58 = vpop.f32.mrf.mxu1 }
 0x372   : > { %2463 = vst [vmem:[%s4461_s8 + $0x70] sm:$0xff] %v2431_v44  ;;  %v2429_v50 = vmax.f32 %v2397_v16, 0.0  ;;  %v2400_v26 = vadd.f32 %v4448_v55, %v2361_v28  ;;  %v2415_v37 = vadd.f32 %v4448_v55, %v2376_v42  ;;  %v2359_v43 = vmul.f32 %v4442_v3, %v2263_v41 }
 0x373   : > { %v2374_v38 = vmul.f32 %v4442_v3, %v2324_v58  ;;  %v2701_v20 = vpop.f32.mrf.mxu1 }
 0x374   : > { %2461 = vst [vmem:[%s4461_s8 + $0x60] sm:$0xff] %v2429_v50  ;;  %v2432_v13 = vmax.f32 %v2400_v26, 0.0  ;;  %v2447_v12 = vmax.f32 %v2415_v37, 0.0  ;;  %v2398_v10 = vadd.f32 %v4448_v55, %v2359_v43  ;;  %v2377_v52 = vmul.f32 %v2701_v20, %v4442_v3 }
 0x375   : > { %v2413_v33 = vadd.f32 %v4448_v55, %v2374_v38  ;;  %v2327_v4 = vpop.f32.mrf.mxu1 }
 0x376   : > { %2464 = vst [vmem:[%s4461_s8 + $0x78] sm:$0xff] %v2432_v13  ;;  %2479 = vst [vmem:[%s4461_s8 + $0xf0] sm:$0xff] %v2447_v12  ;;  %v2430_v40 = vmax.f32 %v2398_v10, 0.0  ;;  %v2416_v57 = vadd.f32 %v4448_v55, %v2377_v52  ;;  %v2375_v8 = vmul.f32 %v4442_v3, %v2327_v4 }
 0x377   : > { %v2445_v60 = vmax.f32 %v2413_v33, 0.0 }
 0x378   : > { %2462 = vst [vmem:[%s4461_s8 + $0x68] sm:$0xff] %v2430_v40  ;;  %v2448_v9 = vmax.f32 %v2416_v57, 0.0  ;;  %v2414_v49 = vadd.f32 %v4448_v55, %v2375_v8 }
 0x379   : > { %2477 = vst [vmem:[%s4461_s8 + $0xe0] sm:$0xff] %v2445_v60 }
 0x37a   : > { %2480 = vst [vmem:[%s4461_s8 + $0xf8] sm:$0xff] %v2448_v9  ;;  %v2446_v30 = vmax.f32 %v2414_v49, 0.0 }
 0x37c   : > { %2478 = vst [vmem:[%s4461_s8 + $0xe8] sm:$0xff] %v2446_v30 }
 0x37d   : > { %2823 = shalt.err (!%p2820_p5)
}
 0x37e   : > { %s2824_s7 = scalar_lea.hbm %s4569_s24, 4096  ;;  %s2828_s30 = scalar_lea.hbm %s4627_s4, 8192 }
 0x37f   : > { %p2825_p6 = scmp.ne.s32.totalorder %s4569_s24, %s2824_s7  ;;  %p2829_p10 = scmp.lt.s32.totalorder %s4569_s24, %s4627_s4 }
 0x380   : > { %p2830_p11 = scmp.lt.s32.totalorder %s2828_s30, %s2824_s7 }
 0x381   : > { %p2826_p7 = pnand %p2825_p6, %p2964_p4 }
 0x382   : > { %p2831_p12 = por %p2830_p11, %p2829_p10 }
 0x383   : > { %p2827_p9 = pneg %p2826_p7 }
 0x385   : > { %p2832_p13 = pnand %p2831_p12, %p2827_p9 }
 0x387   : > { %2835 = shalt.err (!%p2832_p13)
}
 0x388   : > { %s2898_s10 = smov 128  }
 0x389   : > { %2719 = dma.vmem_to_hbm [thread:$0]  (%p2964_p4), %s4572_s14, 4096, %s4569_s24, %s4577_s18, %s2898_s10, %s2898_s10, %s2890_s9  }
 0x38a PF: > { %p2725_p0 = scmp.ge.s32.totalorder %s2886_s20, 2  ;;  %s2513_s21 = sand.u32 1, %s2866_s15  }
 0x38b   : > { %s2514_s22 = scalar_lea.sflag [#allocation4], %s2513_s21 }
 0x38c   : > { %p2722_p1 = pnand %p2725_p0, %p2971_p8 }
 0x38e   : > { %p2723_p2 = pneg %p2722_p1 }
 0x390   : > { %2861 = dma.done.wait (%p2723_p2), %s2514_s22, 4096  }
 0x391   : > { %2863 = vsyncadd (%p2723_p2), %s2514_s22, 4294963200  ;;  %s17_s20 = sadd.s32 1, %s2886_s20   ;;  %s4822_s15 = smov %s2870_s16 }
 0x392   : > { %p14_p3 = scmp.ge.s32.totalorder %s17_s20, 4   ;;  %s4823_s16 = smov %s2874_s17 }
 0x393   : > { %s4824_s17 = smov %s2977_s28  ;;  %s4825_s18 = smov %s2882_s19 }
 0x394   : > { %s4826_s19 = smov %s4828_s23  ;;  %16 = sbr.rel (!%p14_p3) target bundleno = 4 (0x4), region = 72 }
 0x399   :  { %2519 = vsyncpa [#allocation4], 1 }
 0x39a   :  { %2521 = vsyncpa [#allocation4 + $0x1], 1 }

</bundles_post_ra>
